<compile_context>
chip_gen: v7x
topology: tpu7x:2x2x1
jax: 0.10.0
libtpu: 0.0.40
codegen_flags: <defaults>
</compile_context>

<pallas_src>
import functools
import inspect
import math

import jax
import jax.numpy as jnp
from jax import lax
from jax.experimental import pallas as pl
from jax.experimental.pallas import tpu as pltpu


def _round_up(x, m):
    return (x + m - 1) // m * m


def _cdiv(a, b):
    return (a + b - 1) // b


try:
    _HAS_PIPELINE_MODE = (
        "pipeline_mode" in inspect.signature(pl.BlockSpec).parameters
        and hasattr(pl, "Buffered"))
except Exception:  # pragma: no cover
    _HAS_PIPELINE_MODE = False


# ----------------------------- Pallas kernel --------------------------------

def _encoder_layer_kernel(
    # scalar prefetch (SMEM)
    lens_ref,
    # tensor inputs
    x_ref, pe_ref,
    wqkv_ref, bqkv_ref, wo_ref, bo_ref,
    g1_ref, be1_ref, g2_ref, be2_ref,
    w1_ref, bf1_ref, w2_ref, bf2_ref,
    # output
    out_ref,
    *, n_head, d_head, d_head_p, d_model, bt, pre_lnorm, ln_eps,
):
    T = x_ref.shape[1]
    Dp = x_ref.shape[2]
    H = n_head
    Hp = H * d_head_p
    R = bt * T                                     # rows per grid step

    f32 = jnp.float32
    bf16 = jnp.bfloat16
    inv_d = f32(1.0 / d_model)

    # lane-validity mask over the (possibly padded) model dim, for layernorm
    lane_ok = (lax.broadcasted_iota(jnp.int32, (1, Dp), 1) < d_model).astype(f32)

    def layer_norm(h, g, b):
        mu = jnp.sum(h, axis=-1, keepdims=True) * inv_d
        hc = (h - mu) * lane_ok                    # padded lanes forced to 0
        var = jnp.sum(hc * hc, axis=-1, keepdims=True) * inv_d
        return hc * lax.rsqrt(var + ln_eps) * g + b   # g,b zero-padded -> pads stay 0

    # --- positional encoding (dropout is identity in eval mode) ---
    x = x_ref[...]                                 # (Bt, T, Dp) f32, padded lanes 0
    h = (x * f32(math.sqrt(d_model)) + pe_ref[...][None]).reshape(R, Dp)

    # key-padding mask from prefetched lengths (espnet: mask==0 -> pad key)
    b0 = pl.program_id(0) * bt
    key_iota = lax.broadcasted_iota(jnp.int32, (1, 1, T), 2)
    key_pad_i = jnp.stack(
        [(key_iota >= lens_ref[b0 + i]).astype(jnp.int32) for i in range(bt)],
        axis=0)                                    # (Bt, 1, 1, T)
    key_pad = key_pad_i > 0                        # True = masked key

    # ------------------------- self-attention block -------------------------
    residual = h
    h_att = layer_norm(h, g1_ref[...], be1_ref[...]) if pre_lnorm else h

    # fused Q|K|V projection: single matmul, bf16 inputs, f32 accumulation
    qkv = jnp.dot(h_att.astype(bf16), wqkv_ref[...],
                  preferred_element_type=f32) + bqkv_ref[...]
    qkv = qkv.astype(bf16)                         # cast once before relayouts

    def to_heads(a):                               # (R, Hp) -> (Bt*H, T, d_head_p)
        a = a.reshape(bt, T, H, d_head_p)
        return jnp.transpose(a, (0, 2, 1, 3)).reshape(bt * H, T, d_head_p)

    q3 = to_heads(qkv[:, 0 * Hp:1 * Hp])
    k3 = to_heads(qkv[:, 1 * Hp:2 * Hp])
    v3 = to_heads(qkv[:, 2 * Hp:3 * Hp])

    # TODO(synk): for long T (once n_head*T*T*4 bytes approaches a few MiB) the
    # dense score tensor below should become a flash-style key-tiled loop with
    # online-softmax accumulators in VMEM scratch; not needed at these sizes.
    scores = jnp.einsum("gqd,gkd->gqk", q3, k3,
                        preferred_element_type=f32) * f32(1.0 / math.sqrt(d_head))
    scores = jnp.where(key_pad, f32(-1e30), scores.reshape(bt, H, T, T))

    # manual softmax; approximate reciprocal runs on the EUP slot
    m = jnp.max(scores, axis=-1, keepdims=True)
    e = jnp.exp(scores - m)
    s = jnp.sum(e, axis=-1, keepdims=True)
    p = e * pl.reciprocal(s, approx=True)
    p = jnp.where(key_pad, f32(0.0), p)            # espnet zeroes masked attn weights

    # (Bt*H, T, dhp) = P @ V, batched over (batch, head)
    att3 = jnp.einsum("gqk,gkd->gqd",
                      p.reshape(bt * H, T, T).astype(bf16), v3,
                      preferred_element_type=f32)

    # single output projection: (R, Hp) @ (Hp, Dp); K = Hp fills the MXU depth
    att = jnp.transpose(att3.astype(bf16).reshape(bt, H, T, d_head_p),
                        (0, 2, 1, 3)).reshape(R, Hp)
    att_o = jnp.dot(att, wo_ref[...], preferred_element_type=f32) + bo_ref[...]

    h = residual + att_o                           # dropout = identity
    if not pre_lnorm:
        h = layer_norm(h, g1_ref[...], be1_ref[...])

    # --------------------------- feed-forward block --------------------------
    residual = h
    h_ff = layer_norm(h, g2_ref[...], be2_ref[...]) if pre_lnorm else h
    ff = jnp.dot(h_ff.astype(bf16), w1_ref[...],
                 preferred_element_type=f32) + bf1_ref[...]
    ff = jnp.maximum(ff, f32(0.0))                 # ReLU (dropout = identity)
    ff = jnp.dot(ff.astype(bf16), w2_ref[...],
                 preferred_element_type=f32) + bf2_ref[...]

    h = residual + ff
    if not pre_lnorm:
        h = layer_norm(h, g2_ref[...], be2_ref[...])

    out_ref[...] = h.reshape(bt, T, Dp)


# ----------------------------- param packing --------------------------------

def _pack_params(params, *, n_head, d_head, d_head_p, D, Dp, d_inner, Fp):
    bf16 = jnp.bfloat16
    f32 = jnp.float32
    pad_h = d_head_p - d_head
    pad_d = Dp - D
    pad_f = Fp - d_inner

    def qkv_w(w):   # (D, D) -> (Dp, n_head*d_head_p) bf16, head-major columns
        w = w.reshape(D, n_head, d_head)
        w = jnp.pad(w, ((0, pad_d), (0, 0), (0, pad_h)))
        return w.reshape(Dp, n_head * d_head_p).astype(bf16)

    def qkv_b(b):   # (1, D) -> (1, n_head*d_head_p) f32
        b = b.reshape(n_head, d_head)
        b = jnp.pad(b, ((0, 0), (0, pad_h)))
        return b.reshape(1, n_head * d_head_p).astype(f32)

    wqkv = jnp.concatenate(
        [qkv_w(params["wq"]), qkv_w(params["wk"]), qkv_w(params["wv"])], axis=1)
    bqkv = jnp.concatenate(
        [qkv_b(params["bq"]), qkv_b(params["bk"]), qkv_b(params["bv"])], axis=1)

    # output projection packed as a single (Hp, Dp) matrix (head-major rows)
    wo = params["wo"].reshape(n_head, d_head, D)
    wo = jnp.pad(wo, ((0, 0), (0, pad_h), (0, pad_d)))
    wo = wo.reshape(n_head * d_head_p, Dp).astype(bf16)
    bo = jnp.pad(params["bo"], ((0, 0), (0, pad_d))).astype(f32)

    pad_row = lambda a: jnp.pad(a, ((0, 0), (0, pad_d))).astype(f32)
    g1, b1 = pad_row(params["ln1_g"]), pad_row(params["ln1_b"])
    g2, b2 = pad_row(params["ln2_g"]), pad_row(params["ln2_b"])

    w1 = jnp.pad(params["w1"], ((0, pad_d), (0, pad_f))).astype(bf16)   # (Dp, Fp)
    bf1 = jnp.pad(params["b1"], ((0, 0), (0, pad_f))).astype(f32)
    w2 = jnp.pad(params["w2"], ((0, pad_f), (0, pad_d))).astype(bf16)   # (Fp, Dp)
    bf2 = jnp.pad(params["b2"], ((0, 0), (0, pad_d))).astype(f32)

    return wqkv, bqkv, wo, bo, g1, b1, g2, b2, w1, bf1, w2, bf2


# --------------------------- tiling / VMEM sizing -----------------------------

def _pick_bt(B, T, n_head, target_rows=256, max_score_bytes=8 << 20):
    """Sequences per grid step: aim for >= target_rows matmul rows, keep the
    (Bt, H, T, T) f32 score tensor modest, and keep >= 2 grid steps (v7x)."""
    bt = max(1, _cdiv(target_rows, T))
    cap = max(1, max_score_bytes // max(1, n_head * T * T * 4))
    bt = max(1, min(bt, cap, B))
    if bt >= B and B > 1:
        bt = _cdiv(B, 2)           # at least 2 grid steps for the 2-TC v7x
    return bt


def _vmem_limit_bytes(Bt, T, Dp, Hp, Fp, H, consts):
    const_bytes = sum(int(a.size) * a.dtype.itemsize for a in consts)
    act = 2 * 2 * Bt * T * Dp * 4                   # in + out blocks, double-buffered
    scores = 4 * Bt * H * T * T * 4                 # scores / exp / p / temporaries
    work = Bt * T * (3 * Hp + Fp + 4 * Dp) * 4      # qkv + ffn + residual temporaries
    est = int((const_bytes + act + scores + work) * 1.3) + (4 << 20)
    # clamp to a range that is safe on v5e/v6e (128 MiB) and v7x (64 MiB) physical
    return min(max(est, 32 << 20), 64 << 20)


# ------------------------------- wrapper -------------------------------------

def encoder_layer_forward(x, masks, params, *, n_head, d_head, pre_lnorm=False,
                          ln_eps=1e-12, lane_align=128, return_padded=False):
    """x: (B, T, D) f32, masks: (B, 1, T), nonzero = valid frame.  Returns (y, masks).

    lane_align: pad d_model/d_inner to this multiple (use 256 on v6e/v7x when
    D >= 256 so matmul contraction dims fill the 256-deep MXU).
    return_padded: hand back the zero-padded (B, T, Dp) tensor and skip the
    extra HBM pass of the final [:, :, :D] slice (pad lanes are exactly 0)."""
    B, T, D = x.shape
    assert D == n_head * d_head
    d_inner = params["w1"].shape[1]

    Dp = _round_up(D, lane_align)           # lane-dense model dim
    Fp = _round_up(d_inner, lane_align)     # lane-dense FFN inner dim
    assert Dp % n_head == 0, "n_head must divide the padded model dim"
    d_head_p = Dp // n_head
    Hp = n_head * d_head_p

    (wqkv, bqkv, wo, bo, g1, b1, g2, b2,
     w1, bf1, w2, bf2) = _pack_params(
        params, n_head=n_head, d_head=d_head, d_head_p=d_head_p,
        D=D, Dp=Dp, d_inner=d_inner, Fp=Fp)

    # batch tiling: Bt sequences per grid step -> Bt*T-row matmuls
    Bt = _pick_bt(B, T, n_head)
    Bg = _cdiv(B, Bt)
    B_pad = Bg * Bt

    x_p = jnp.pad(x.astype(jnp.float32),
                  ((0, B_pad - B), (0, 0), (0, Dp - D)))
    pe = _sinusoidal_pe(T, D, Dp)

    # TODO(synk): the dense (B,1,T) mask is reduced to per-example valid lengths
    # (standard contiguous-prefix espnet length mask); arbitrary mask patterns
    # would need the dense-mask path instead of the iota compare.
    lengths = jnp.sum((masks != 0).astype(jnp.int32), axis=(1, 2)).astype(jnp.int32)
    lengths = jnp.pad(lengths, (0, B_pad - B))      # padded rows: length 0

    kernel = functools.partial(
        _encoder_layer_kernel,
        n_head=n_head, d_head=d_head, d_head_p=d_head_p, d_model=D,
        bt=Bt, pre_lnorm=pre_lnorm, ln_eps=ln_eps)

    def const_spec(a):
        # constant-index weights / PE: fetched once, so single-buffer them to
        # halve resident VMEM (they never overlap-prefetch anyway).
        nd = a.ndim
        idx = lambda b, lens, nd=nd: (0,) * nd
        if _HAS_PIPELINE_MODE:
            return pl.BlockSpec(a.shape, idx, pipeline_mode=pl.Buffered(1))
        return pl.BlockSpec(a.shape, idx)

    grid_spec = pltpu.PrefetchScalarGridSpec(
        num_scalar_prefetch=1,
        grid=(Bg,),
        in_specs=[
            pl.BlockSpec((Bt, T, Dp), lambda b, lens: (b, 0, 0)),   # x
            const_spec(pe),
            const_spec(wqkv), const_spec(bqkv), const_spec(wo), const_spec(bo),
            const_spec(g1), const_spec(b1), const_spec(g2), const_spec(b2),
            const_spec(w1), const_spec(bf1), const_spec(w2), const_spec(bf2),
        ],
        out_specs=pl.BlockSpec((Bt, T, Dp), lambda b, lens: (b, 0, 0)),
    )

    vmem_limit = _vmem_limit_bytes(
        Bt, T, Dp, Hp, Fp, n_head,
        [pe, wqkv, bqkv, wo, bo, g1, b1, g2, b2, w1, bf1, w2, bf2])

    out = pl.pallas_call(
        kernel,
        out_shape=jax.ShapeDtypeStruct((B_pad, T, Dp), jnp.float32),
        grid_spec=grid_spec,
        compiler_params=pltpu.CompilerParams(
            dimension_semantics=("parallel",),
            vmem_limit_bytes=vmem_limit),
    )(lengths, x_p, pe, wqkv, bqkv, wo, bo, g1, b1, g2, b2, w1, bf1, w2, bf2)

    if B_pad != B:
        out = out[:B]
    if return_padded:
        return out, masks
    # tgt_len == T and mems is None (mem_len=0) -> hidden[:, -T:] is everything;
    # drop the lane padding back to d_model (one extra HBM pass; see return_padded).
    return out[:, :, :D], masks


def _sinusoidal_pe(T, D, Dp=None):
    if Dp is None:
        Dp = D
    position = jnp.arange(T, dtype=jnp.float32)[:, None]
    div_term = jnp.exp(jnp.arange(0, D, 2, dtype=jnp.float32) * (-math.log(10000.0) / D))
    pe = jnp.zeros((T, Dp), dtype=jnp.float32)
    pe = pe.at[:, 0:D:2].set(jnp.sin(position * div_term))
    pe = pe.at[:, 1:D:2].set(jnp.cos(position * div_term))
    return pe


# -------------------------- pure-JAX reference --------------------------------

def _reference(x, masks, params, *, n_head, d_head, pre_lnorm=False, eps=1e-12,
               matmul_dtype=jnp.float32):
    """matmul_dtype=f32 -> exact module semantics; bf16 -> mirrors the kernel's
    MXU-input casts (accumulation stays f32 in both)."""
    B, T, D = x.shape
    pe = _sinusoidal_pe(T, D)
    c = lambda a: a.astype(matmul_dtype)
    mm = lambda a, b: jnp.dot(c(a), c(b), preferred_element_type=jnp.float32)

    def ln(h, g, b):
        mu = jnp.mean(h, -1, keepdims=True)
        var = jnp.mean((h - mu) ** 2, -1, keepdims=True)
        return (h - mu) / jnp.sqrt(var + eps) * g + b

    h = x * math.sqrt(D) + pe[None]
    residual = h
    ha = ln(h, params["ln1_g"], params["ln1_b"]) if pre_lnorm else h
    q = mm(ha, params["wq"]) + params["bq"]
    k = mm(ha, params["wk"]) + params["bk"]
    v = mm(ha, params["wv"]) + params["bv"]
    q = q.reshape(B, T, n_head, d_head).transpose(0, 2, 1, 3)
    k = k.reshape(B, T, n_head, d_head).transpose(0, 2, 1, 3)
    v = v.reshape(B, T, n_head, d_head).transpose(0, 2, 1, 3)
    scores = jnp.einsum("bhqd,bhkd->bhqk", c(q), c(k),
                        preferred_element_type=jnp.float32) / math.sqrt(d_head)
    m = (masks[:, None, :, :] == 0)
    scores = jnp.where(m, -1e30, scores)
    p = jax.nn.softmax(scores, -1)
    p = jnp.where(m, 0.0, p)
    att = jnp.einsum("bhqk,bhkd->bhqd", c(p), c(v),
                     preferred_element_type=jnp.float32)
    att = att.transpose(0, 2, 1, 3).reshape(B, T, D)
    att = mm(att, params["wo"]) + params["bo"]
    h = residual + att
    if not pre_lnorm:
        h = ln(h, params["ln1_g"], params["ln1_b"])
    residual = h
    hf = ln(h, params["ln2_g"], params["ln2_b"]) if pre_lnorm else h
    ff = jnp.maximum(mm(hf, params["w1"]) + params["b1"], 0.0)
    ff = mm(ff, params["w2"]) + params["b2"]
    h = residual + ff
    if not pre_lnorm:
        h = ln(h, params["ln2_g"], params["ln2_b"])
    return h


# --------------------------------- main ---------------------------------------

if __name__ == "__main__":
    B, T = 2, 8
    n_head, d_head = 4, 8
    D = n_head * d_head          # d_model = 32
    d_inner = 64

    key = jax.random.PRNGKey(0)
    ks = jax.random.split(key, 12)
    s = 0.05

    params = {
        "wq": jax.random.normal(ks[0], (D, D), jnp.float32) * s,
        "bq": jnp.zeros((1, D), jnp.float32),
        "wk": jax.random.normal(ks[1], (D, D), jnp.float32) * s,
        "bk": jnp.zeros((1, D), jnp.float32),
        "wv": jax.random.normal(ks[2], (D, D), jnp.float32) * s,
        "bv": jnp.zeros((1, D), jnp.float32),
        "wo": jax.random.normal(ks[3], (D, D), jnp.float32) * s,
        "bo": jnp.zeros((1, D), jnp.float32),
        "ln1_g": jnp.ones((1, D), jnp.float32),
        "ln1_b": jnp.zeros((1, D), jnp.float32),
        "ln2_g": jnp.ones((1, D), jnp.float32),
        "ln2_b": jnp.zeros((1, D), jnp.float32),
        "w1": jax.random.normal(ks[4], (D, d_inner), jnp.float32) * s,
        "b1": jax.random.normal(ks[5], (1, d_inner), jnp.float32) * s,
        "w2": jax.random.normal(ks[6], (d_inner, D), jnp.float32) * s,
        "b2": jax.random.normal(ks[7], (1, D), jnp.float32) * s,
    }

    x = jax.random.normal(ks[8], (B, T, D), jnp.float32)
    # mask: nonzero = valid frame (espnet MHA convention); batch 1 has 2 padded frames
    lengths = jnp.array([T, T - 2])
    masks = (jnp.arange(T)[None, None, :] < lengths[:, None, None]).astype(jnp.float32)

    # TODO(synk): dropout / dropatt are identity (eval mode); mem_len=0 so the
    # memory-update path (_update_mems) is a no-op and is not implemented.

    y, m_out = encoder_layer_forward(
        x, masks, params, n_head=n_head, d_head=d_head, pre_lnorm=False)
    y = jax.block_until_ready(y)
    assert y.shape == (B, T, D)

    # structural check: reference with the same bf16 MXU-input casts (tight)
    y_bf = _reference(x, masks, params, n_head=n_head, d_head=d_head,
                      pre_lnorm=False, matmul_dtype=jnp.bfloat16)
    # semantic check: pure-f32 reference (bf16 MXU inputs are an intentional
    # performance approximation; residual+layernorm keeps the error tiny)
    y_f32 = _reference(x, masks, params, n_head=n_head, d_head=d_head,
                       pre_lnorm=False, matmul_dtype=jnp.float32)

    err_bf = float(jnp.max(jnp.abs(y - y_bf)))
    err_f32 = float(jnp.max(jnp.abs(y - y_f32)))
    assert jnp.allclose(y, y_bf, atol=3e-3, rtol=3e-3), err_bf
    assert jnp.allclose(y, y_f32, atol=3e-2, rtol=3e-2), err_f32

    print("KERNEL_OK")
</pallas_src>

<mosaic_0001>
module attributes {stable_mosaic.version = 11 : i64} {
  func.func @_encoder_layer_kernel(%arg0: i32, %arg1: memref<2xi32, #tpu.memory_space<smem>>, %arg2: memref<1x8x128xf32, #tpu.memory_space<vmem>>, %arg3: memref<8x128xf32, #tpu.memory_space<vmem>>, %arg4: memref<128x384xbf16, #tpu.memory_space<vmem>>, %arg5: memref<1x384xf32, #tpu.memory_space<vmem>>, %arg6: memref<128x128xbf16, #tpu.memory_space<vmem>>, %arg7: memref<1x128xf32, #tpu.memory_space<vmem>>, %arg8: memref<1x128xf32, #tpu.memory_space<vmem>>, %arg9: memref<1x128xf32, #tpu.memory_space<vmem>>, %arg10: memref<1x128xf32, #tpu.memory_space<vmem>>, %arg11: memref<1x128xf32, #tpu.memory_space<vmem>>, %arg12: memref<128x128xbf16, #tpu.memory_space<vmem>>, %arg13: memref<1x128xf32, #tpu.memory_space<vmem>>, %arg14: memref<128x128xbf16, #tpu.memory_space<vmem>>, %arg15: memref<1x128xf32, #tpu.memory_space<vmem>>, %arg16: memref<1x8x128xf32, #tpu.memory_space<vmem>>) attributes {dimension_semantics = [#tpu.dimension_semantics<parallel>], iteration_bounds = array<i64: 2>, scalar_prefetch = 1 : i64, scratch_operands = 0 : i64, tpu.core_type = #tpu.core_type<tc>, window_params = [{transform_indices = @transform_0, window_bounds = array<i64: 1, 8, 128>}, {pipeline_mode = #tpu.pipeline_mode<synchronous>, transform_indices = @transform_1, window_bounds = array<i64: 8, 128>}, {pipeline_mode = #tpu.pipeline_mode<synchronous>, transform_indices = @transform_2, window_bounds = array<i64: 128, 384>}, {pipeline_mode = #tpu.pipeline_mode<synchronous>, transform_indices = @transform_3, window_bounds = array<i64: 1, 384>}, {pipeline_mode = #tpu.pipeline_mode<synchronous>, transform_indices = @transform_4, window_bounds = array<i64: 128, 128>}, {pipeline_mode = #tpu.pipeline_mode<synchronous>, transform_indices = @transform_5, window_bounds = array<i64: 1, 128>}, {pipeline_mode = #tpu.pipeline_mode<synchronous>, transform_indices = @transform_6, window_bounds = array<i64: 1, 128>}, {pipeline_mode = #tpu.pipeline_mode<synchronous>, transform_indices = @transform_7, window_bounds = array<i64: 1, 128>}, {pipeline_mode = #tpu.pipeline_mode<synchronous>, transform_indices = @transform_8, window_bounds = array<i64: 1, 128>}, {pipeline_mode = #tpu.pipeline_mode<synchronous>, transform_indices = @transform_9, window_bounds = array<i64: 1, 128>}, {pipeline_mode = #tpu.pipeline_mode<synchronous>, transform_indices = @transform_10, window_bounds = array<i64: 128, 128>}, {pipeline_mode = #tpu.pipeline_mode<synchronous>, transform_indices = @transform_11, window_bounds = array<i64: 1, 128>}, {pipeline_mode = #tpu.pipeline_mode<synchronous>, transform_indices = @transform_12, window_bounds = array<i64: 128, 128>}, {pipeline_mode = #tpu.pipeline_mode<synchronous>, transform_indices = @transform_13, window_bounds = array<i64: 1, 128>}, {transform_indices = @transform_14, window_bounds = array<i64: 1, 8, 128>}]} {
    %0 = tpu.iota {dimensions = array<i32: 1>} : vector<1x128xi32>
    %c32_i32 = arith.constant 32 : i32
    %1 = vector.broadcast %c32_i32 : i32 to vector<1x128xi32>
    %2 = arith.cmpi slt, %0, %1 : vector<1x128xi32>
    %3 = arith.extui %2 : vector<1x128xi1> to vector<1x128xi32>
    %4 = arith.sitofp %3 : vector<1x128xi32> to vector<1x128xf32>
    %c0 = arith.constant 0 : index
    %c0_0 = arith.constant 0 : index
    %c0_1 = arith.constant 0 : index
    %5 = vector.load %arg2[%c0, %c0_0, %c0_1] : memref<1x8x128xf32, #tpu.memory_space<vmem>>, vector<1x8x128xf32>
    %cst = arith.constant 5.65685415 : f32
    %6 = vector.broadcast %cst : f32 to vector<1x8x128xf32>
    %7 = arith.mulf %5, %6 : vector<1x8x128xf32>
    %c0_2 = arith.constant 0 : index
    %c0_3 = arith.constant 0 : index
    %8 = vector.load %arg3[%c0_2, %c0_3] : memref<8x128xf32, #tpu.memory_space<vmem>>, vector<8x128xf32>
    %9 = vector.shape_cast %8 : vector<8x128xf32> to vector<1x8x128xf32>
    %10 = arith.addf %7, %9 : vector<1x8x128xf32>
    %11 = vector.shape_cast %10 : vector<1x8x128xf32> to vector<8x128xf32>
    %c1_i32 = arith.constant 1 : i32
    %12 = arith.muli %arg0, %c1_i32 : i32
    %13 = tpu.iota {dimensions = array<i32: 2>} : vector<1x1x8xi32>
    %c0_i32 = arith.constant 0 : i32
    %14 = arith.addi %12, %c0_i32 : i32
    %15 = arith.index_cast %14 : i32 to index
    %16 = memref.load %arg1[%15] : memref<2xi32, #tpu.memory_space<smem>>
    %17 = vector.broadcast %16 : i32 to vector<1x1x8xi32>
    %18 = arith.cmpi sge, %13, %17 : vector<1x1x8xi32>
    %19 = arith.extui %18 : vector<1x1x8xi1> to vector<1x1x8xi32>
    %20 = vector.shape_cast %19 : vector<1x1x8xi32> to vector<1x1x1x8xi32>
    %c0_i32_4 = arith.constant 0 : i32
    %21 = vector.broadcast %c0_i32_4 : i32 to vector<1x1x1x8xi32>
    %22 = arith.cmpi sgt, %20, %21 : vector<1x1x1x8xi32>
    %23 = arith.truncf %11 : vector<8x128xf32> to vector<8x128xbf16>
    %c0_5 = arith.constant 0 : index
    %c0_6 = arith.constant 0 : index
    %24 = vector.load %arg4[%c0_5, %c0_6] : memref<128x384xbf16, #tpu.memory_space<vmem>>, vector<128x384xbf16>
    %cst_7 = arith.constant dense<0.000000e+00> : vector<8x384xf32>
    %25 = tpu.matmul %23, %24, %cst_7 {dimension_numbers = #tpu.dot_dimension_numbers<[1], [0], [0], [1], [0, 0, 1, 1], [], []>} : vector<8x128xbf16>, vector<128x384xbf16>, vector<8x384xf32> -> vector<8x384xf32>
    %c0_8 = arith.constant 0 : index
    %c0_9 = arith.constant 0 : index
    %26 = vector.load %arg5[%c0_8, %c0_9] : memref<1x384xf32, #tpu.memory_space<vmem>>, vector<1x384xf32>
    %27 = vector.broadcast %26 : vector<1x384xf32> to vector<8x384xf32>
    %28 = arith.addf %25, %27 : vector<8x384xf32>
    %29 = arith.truncf %28 : vector<8x384xf32> to vector<8x384xbf16>
    %30 = vector.extract_strided_slice %29 {offsets = [0, 0], sizes = [8, 128], strides = [1, 1]} : vector<8x384xbf16> to vector<8x128xbf16>
    %31 = vector.shape_cast %30 : vector<8x128xbf16> to vector<1x8x4x32xbf16>
    %32 = tpu.transpose %31, [0, 2, 1, 3] : vector<1x8x4x32xbf16> -> vector<1x4x8x32xbf16>
    %33 = vector.shape_cast %32 : vector<1x4x8x32xbf16> to vector<4x8x32xbf16>
    %34 = vector.extract_strided_slice %29 {offsets = [0, 128], sizes = [8, 128], strides = [1, 1]} : vector<8x384xbf16> to vector<8x128xbf16>
    %35 = vector.shape_cast %34 : vector<8x128xbf16> to vector<1x8x4x32xbf16>
    %36 = tpu.transpose %35, [0, 2, 1, 3] : vector<1x8x4x32xbf16> -> vector<1x4x8x32xbf16>
    %37 = vector.shape_cast %36 : vector<1x4x8x32xbf16> to vector<4x8x32xbf16>
    %38 = vector.extract_strided_slice %29 {offsets = [0, 256], sizes = [8, 128], strides = [1, 1]} : vector<8x384xbf16> to vector<8x128xbf16>
    %39 = vector.shape_cast %38 : vector<8x128xbf16> to vector<1x8x4x32xbf16>
    %40 = tpu.transpose %39, [0, 2, 1, 3] : vector<1x8x4x32xbf16> -> vector<1x4x8x32xbf16>
    %41 = vector.shape_cast %40 : vector<1x4x8x32xbf16> to vector<4x8x32xbf16>
    "tpu.trace_start"() <{level = 10 : i32, message = "gqd,gkd->gqk"}> : () -> ()
    %cst_10 = arith.constant dense<0.000000e+00> : vector<4x8x8xf32>
    %42 = tpu.matmul %33, %37, %cst_10 {dimension_numbers = #tpu.dot_dimension_numbers<[2], [2], [1], [1], [0, 0, 0, 1, 1, 1], [0], [0]>} : vector<4x8x32xbf16>, vector<4x8x32xbf16>, vector<4x8x8xf32> -> vector<4x8x8xf32>
    "tpu.trace_stop"() : () -> ()
    %cst_11 = arith.constant 0.353553385 : f32
    %43 = vector.broadcast %cst_11 : f32 to vector<4x8x8xf32>
    %44 = arith.mulf %42, %43 : vector<4x8x8xf32>
    %45 = vector.shape_cast %44 : vector<4x8x8xf32> to vector<1x4x8x8xf32>
    %cst_12 = arith.constant -1.000000e+30 : f32
    %46 = vector.shape_cast %22 : vector<1x1x1x8xi1> to vector<1x1x1x8xi1>
    %47 = vector.broadcast %46 : vector<1x1x1x8xi1> to vector<1x4x8x8xi1>
    %48 = vector.broadcast %cst_12 : f32 to vector<1x4x8x8xf32>
    %49 = arith.select %47, %48, %45 : vector<1x4x8x8xi1>, vector<1x4x8x8xf32>
    %cst_13 = arith.constant dense<0xFF800000> : vector<1x4x8xf32>
    %50 = vector.multi_reduction <maximumf>, %49, %cst_13 [3] : vector<1x4x8x8xf32> to vector<1x4x8xf32>
    %51 = vector.shape_cast %50 : vector<1x4x8xf32> to vector<1x4x8x1xf32>
    %52 = vector.broadcast %51 : vector<1x4x8x1xf32> to vector<1x4x8x8xf32>
    %53 = arith.subf %49, %52 : vector<1x4x8x8xf32>
    %54 = math.exp %53 : vector<1x4x8x8xf32>
    %cst_14 = arith.constant dense<0.000000e+00> : vector<1x4x8xf32>
    %55 = vector.multi_reduction <add>, %54, %cst_14 [3] : vector<1x4x8x8xf32> to vector<1x4x8xf32>
    %56 = vector.shape_cast %55 : vector<1x4x8xf32> to vector<1x4x8x1xf32>
    %57 = tpu.reciprocal %56 {approx = true} : vector<1x4x8x1xf32> -> vector<1x4x8x1xf32>
    %58 = vector.broadcast %57 : vector<1x4x8x1xf32> to vector<1x4x8x8xf32>
    %59 = arith.mulf %54, %58 : vector<1x4x8x8xf32>
    %cst_15 = arith.constant 0.000000e+00 : f32
    %60 = vector.shape_cast %22 : vector<1x1x1x8xi1> to vector<1x1x1x8xi1>
    %61 = vector.broadcast %60 : vector<1x1x1x8xi1> to vector<1x4x8x8xi1>
    %62 = vector.broadcast %cst_15 : f32 to vector<1x4x8x8xf32>
    %63 = arith.select %61, %62, %59 : vector<1x4x8x8xi1>, vector<1x4x8x8xf32>
    %64 = vector.shape_cast %63 : vector<1x4x8x8xf32> to vector<4x8x8xf32>
    %65 = arith.truncf %64 : vector<4x8x8xf32> to vector<4x8x8xbf16>
    "tpu.trace_start"() <{level = 10 : i32, message = "gqk,gkd->gqd"}> : () -> ()
    %cst_16 = arith.constant dense<0.000000e+00> : vector<4x8x32xf32>
    %66 = tpu.matmul %65, %41, %cst_16 {dimension_numbers = #tpu.dot_dimension_numbers<[2], [1], [1], [2], [0, 0, 0, 1, 1, 2], [0], [0]>} : vector<4x8x8xbf16>, vector<4x8x32xbf16>, vector<4x8x32xf32> -> vector<4x8x32xf32>
    "tpu.trace_stop"() : () -> ()
    %67 = arith.truncf %66 : vector<4x8x32xf32> to vector<4x8x32xbf16>
    %68 = vector.shape_cast %67 : vector<4x8x32xbf16> to vector<1x4x8x32xbf16>
    %69 = tpu.transpose %68, [0, 2, 1, 3] : vector<1x4x8x32xbf16> -> vector<1x8x4x32xbf16>
    %70 = vector.shape_cast %69 : vector<1x8x4x32xbf16> to vector<8x128xbf16>
    %c0_17 = arith.constant 0 : index
    %c0_18 = arith.constant 0 : index
    %71 = vector.load %arg6[%c0_17, %c0_18] : memref<128x128xbf16, #tpu.memory_space<vmem>>, vector<128x128xbf16>
    %cst_19 = arith.constant dense<0.000000e+00> : vector<8x128xf32>
    %72 = tpu.matmul %70, %71, %cst_19 {dimension_numbers = #tpu.dot_dimension_numbers<[1], [0], [0], [1], [0, 0, 1, 1], [], []>} : vector<8x128xbf16>, vector<128x128xbf16>, vector<8x128xf32> -> vector<8x128xf32>
    %c0_20 = arith.constant 0 : index
    %c0_21 = arith.constant 0 : index
    %73 = vector.load %arg7[%c0_20, %c0_21] : memref<1x128xf32, #tpu.memory_space<vmem>>, vector<1x128xf32>
    %74 = vector.broadcast %73 : vector<1x128xf32> to vector<8x128xf32>
    %75 = arith.addf %72, %74 : vector<8x128xf32>
    %76 = arith.addf %11, %75 : vector<8x128xf32>
    %c0_22 = arith.constant 0 : index
    %c0_23 = arith.constant 0 : index
    %77 = vector.load %arg8[%c0_22, %c0_23] : memref<1x128xf32, #tpu.memory_space<vmem>>, vector<1x128xf32>
    %c0_24 = arith.constant 0 : index
    %c0_25 = arith.constant 0 : index
    %78 = vector.load %arg9[%c0_24, %c0_25] : memref<1x128xf32, #tpu.memory_space<vmem>>, vector<1x128xf32>
    %cst_26 = arith.constant dense<0.000000e+00> : vector<8xf32>
    %79 = vector.multi_reduction <add>, %76, %cst_26 [1] : vector<8x128xf32> to vector<8xf32>
    %80 = vector.shape_cast %79 : vector<8xf32> to vector<8x1xf32>
    %cst_27 = arith.constant 3.125000e-02 : f32
    %81 = vector.broadcast %cst_27 : f32 to vector<8x1xf32>
    %82 = arith.mulf %80, %81 : vector<8x1xf32>
    %83 = vector.broadcast %82 : vector<8x1xf32> to vector<8x128xf32>
    %84 = arith.subf %76, %83 : vector<8x128xf32>
    %85 = vector.broadcast %4 : vector<1x128xf32> to vector<8x128xf32>
    %86 = arith.mulf %84, %85 : vector<8x128xf32>
    %87 = arith.mulf %86, %86 : vector<8x128xf32>
    %cst_28 = arith.constant dense<0.000000e+00> : vector<8xf32>
    %88 = vector.multi_reduction <add>, %87, %cst_28 [1] : vector<8x128xf32> to vector<8xf32>
    %89 = vector.shape_cast %88 : vector<8xf32> to vector<8x1xf32>
    %cst_29 = arith.constant 3.125000e-02 : f32
    %90 = vector.broadcast %cst_29 : f32 to vector<8x1xf32>
    %91 = arith.mulf %89, %90 : vector<8x1xf32>
    %cst_30 = arith.constant 9.99999996E-13 : f32
    %92 = vector.broadcast %cst_30 : f32 to vector<8x1xf32>
    %93 = arith.addf %91, %92 : vector<8x1xf32>
    %94 = math.rsqrt %93 : vector<8x1xf32>
    %95 = vector.broadcast %94 : vector<8x1xf32> to vector<8x128xf32>
    %96 = arith.mulf %86, %95 : vector<8x128xf32>
    %97 = vector.broadcast %77 : vector<1x128xf32> to vector<8x128xf32>
    %98 = arith.mulf %96, %97 : vector<8x128xf32>
    %99 = vector.broadcast %78 : vector<1x128xf32> to vector<8x128xf32>
    %100 = arith.addf %98, %99 : vector<8x128xf32>
    %101 = arith.truncf %100 : vector<8x128xf32> to vector<8x128xbf16>
    %c0_31 = arith.constant 0 : index
    %c0_32 = arith.constant 0 : index
    %102 = vector.load %arg12[%c0_31, %c0_32] : memref<128x128xbf16, #tpu.memory_space<vmem>>, vector<128x128xbf16>
    %cst_33 = arith.constant dense<0.000000e+00> : vector<8x128xf32>
    %103 = tpu.matmul %101, %102, %cst_33 {dimension_numbers = #tpu.dot_dimension_numbers<[1], [0], [0], [1], [0, 0, 1, 1], [], []>} : vector<8x128xbf16>, vector<128x128xbf16>, vector<8x128xf32> -> vector<8x128xf32>
    %c0_34 = arith.constant 0 : index
    %c0_35 = arith.constant 0 : index
    %104 = vector.load %arg13[%c0_34, %c0_35] : memref<1x128xf32, #tpu.memory_space<vmem>>, vector<1x128xf32>
    %105 = vector.broadcast %104 : vector<1x128xf32> to vector<8x128xf32>
    %106 = arith.addf %103, %105 : vector<8x128xf32>
    %cst_36 = arith.constant 0.000000e+00 : f32
    %107 = vector.broadcast %cst_36 : f32 to vector<8x128xf32>
    %108 = arith.maximumf %106, %107 : vector<8x128xf32>
    %109 = arith.truncf %108 : vector<8x128xf32> to vector<8x128xbf16>
    %c0_37 = arith.constant 0 : index
    %c0_38 = arith.constant 0 : index
    %110 = vector.load %arg14[%c0_37, %c0_38] : memref<128x128xbf16, #tpu.memory_space<vmem>>, vector<128x128xbf16>
    %cst_39 = arith.constant dense<0.000000e+00> : vector<8x128xf32>
    %111 = tpu.matmul %109, %110, %cst_39 {dimension_numbers = #tpu.dot_dimension_numbers<[1], [0], [0], [1], [0, 0, 1, 1], [], []>} : vector<8x128xbf16>, vector<128x128xbf16>, vector<8x128xf32> -> vector<8x128xf32>
    %c0_40 = arith.constant 0 : index
    %c0_41 = arith.constant 0 : index
    %112 = vector.load %arg15[%c0_40, %c0_41] : memref<1x128xf32, #tpu.memory_space<vmem>>, vector<1x128xf32>
    %113 = vector.broadcast %112 : vector<1x128xf32> to vector<8x128xf32>
    %114 = arith.addf %111, %113 : vector<8x128xf32>
    %115 = arith.addf %100, %114 : vector<8x128xf32>
    %c0_42 = arith.constant 0 : index
    %c0_43 = arith.constant 0 : index
    %116 = vector.load %arg10[%c0_42, %c0_43] : memref<1x128xf32, #tpu.memory_space<vmem>>, vector<1x128xf32>
    %c0_44 = arith.constant 0 : index
    %c0_45 = arith.constant 0 : index
    %117 = vector.load %arg11[%c0_44, %c0_45] : memref<1x128xf32, #tpu.memory_space<vmem>>, vector<1x128xf32>
    %cst_46 = arith.constant dense<0.000000e+00> : vector<8xf32>
    %118 = vector.multi_reduction <add>, %115, %cst_46 [1] : vector<8x128xf32> to vector<8xf32>
    %119 = vector.shape_cast %118 : vector<8xf32> to vector<8x1xf32>
    %cst_47 = arith.constant 3.125000e-02 : f32
    %120 = vector.broadcast %cst_47 : f32 to vector<8x1xf32>
    %121 = arith.mulf %119, %120 : vector<8x1xf32>
    %122 = vector.broadcast %121 : vector<8x1xf32> to vector<8x128xf32>
    %123 = arith.subf %115, %122 : vector<8x128xf32>
    %124 = vector.broadcast %4 : vector<1x128xf32> to vector<8x128xf32>
    %125 = arith.mulf %123, %124 : vector<8x128xf32>
    %126 = arith.mulf %125, %125 : vector<8x128xf32>
    %cst_48 = arith.constant dense<0.000000e+00> : vector<8xf32>
    %127 = vector.multi_reduction <add>, %126, %cst_48 [1] : vector<8x128xf32> to vector<8xf32>
    %128 = vector.shape_cast %127 : vector<8xf32> to vector<8x1xf32>
    %cst_49 = arith.constant 3.125000e-02 : f32
    %129 = vector.broadcast %cst_49 : f32 to vector<8x1xf32>
    %130 = arith.mulf %128, %129 : vector<8x1xf32>
    %cst_50 = arith.constant 9.99999996E-13 : f32
    %131 = vector.broadcast %cst_50 : f32 to vector<8x1xf32>
    %132 = arith.addf %130, %131 : vector<8x1xf32>
    %133 = math.rsqrt %132 : vector<8x1xf32>
    %134 = vector.broadcast %133 : vector<8x1xf32> to vector<8x128xf32>
    %135 = arith.mulf %125, %134 : vector<8x128xf32>
    %136 = vector.broadcast %116 : vector<1x128xf32> to vector<8x128xf32>
    %137 = arith.mulf %135, %136 : vector<8x128xf32>
    %138 = vector.broadcast %117 : vector<1x128xf32> to vector<8x128xf32>
    %139 = arith.addf %137, %138 : vector<8x128xf32>
    %140 = vector.shape_cast %139 : vector<8x128xf32> to vector<1x8x128xf32>
    %c0_51 = arith.constant 0 : index
    %c0_52 = arith.constant 0 : index
    %c0_53 = arith.constant 0 : index
    %141 = vector.load %arg16[%c0_51, %c0_52, %c0_53] : memref<1x8x128xf32, #tpu.memory_space<vmem>>, vector<1x8x128xf32>
    tpu.vector_store %arg16[%c0_51, %c0_52, %c0_53], %140 {strides = array<i32>} : memref<1x8x128xf32, #tpu.memory_space<vmem>>, vector<1x8x128xf32>,
    return
  }
  func.func @transform_0(%arg0: i32, %arg1: memref<2xi32, #tpu.memory_space<smem>>) -> (i32, i32, i32) {
    %c0_i32 = arith.constant 0 : i32
    %c0_i32_0 = arith.constant 0 : i32
    %c0_i32_1 = arith.constant 0 : i32
    return %arg0, %c0_i32, %c0_i32_0 : i32, i32, i32
  }
  func.func @transform_1(%arg0: i32, %arg1: memref<2xi32, #tpu.memory_space<smem>>) -> (i32, i32) {
    %c0_i32 = arith.constant 0 : i32
    %c0_i32_0 = arith.constant 0 : i32
    %c0_i32_1 = arith.constant 0 : i32
    return %c0_i32, %c0_i32_0 : i32, i32
  }
  func.func @transform_2(%arg0: i32, %arg1: memref<2xi32, #tpu.memory_space<smem>>) -> (i32, i32) {
    %c0_i32 = arith.constant 0 : i32
    %c0_i32_0 = arith.constant 0 : i32
    %c0_i32_1 = arith.constant 0 : i32
    return %c0_i32, %c0_i32_0 : i32, i32
  }
  func.func @transform_3(%arg0: i32, %arg1: memref<2xi32, #tpu.memory_space<smem>>) -> (i32, i32) {
    %c0_i32 = arith.constant 0 : i32
    %c0_i32_0 = arith.constant 0 : i32
    %c0_i32_1 = arith.constant 0 : i32
    return %c0_i32, %c0_i32_0 : i32, i32
  }
  func.func @transform_4(%arg0: i32, %arg1: memref<2xi32, #tpu.memory_space<smem>>) -> (i32, i32) {
    %c0_i32 = arith.constant 0 : i32
    %c0_i32_0 = arith.constant 0 : i32
    %c0_i32_1 = arith.constant 0 : i32
    return %c0_i32, %c0_i32_0 : i32, i32
  }
  func.func @transform_5(%arg0: i32, %arg1: memref<2xi32, #tpu.memory_space<smem>>) -> (i32, i32) {
    %c0_i32 = arith.constant 0 : i32
    %c0_i32_0 = arith.constant 0 : i32
    %c0_i32_1 = arith.constant 0 : i32
    return %c0_i32, %c0_i32_0 : i32, i32
  }
  func.func @transform_6(%arg0: i32, %arg1: memref<2xi32, #tpu.memory_space<smem>>) -> (i32, i32) {
    %c0_i32 = arith.constant 0 : i32
    %c0_i32_0 = arith.constant 0 : i32
    %c0_i32_1 = arith.constant 0 : i32
    return %c0_i32, %c0_i32_0 : i32, i32
  }
  func.func @transform_7(%arg0: i32, %arg1: memref<2xi32, #tpu.memory_space<smem>>) -> (i32, i32) {
    %c0_i32 = arith.constant 0 : i32
    %c0_i32_0 = arith.constant 0 : i32
    %c0_i32_1 = arith.constant 0 : i32
    return %c0_i32, %c0_i32_0 : i32, i32
  }
  func.func @transform_8(%arg0: i32, %arg1: memref<2xi32, #tpu.memory_space<smem>>) -> (i32, i32) {
    %c0_i32 = arith.constant 0 : i32
    %c0_i32_0 = arith.constant 0 : i32
    %c0_i32_1 = arith.constant 0 : i32
    return %c0_i32, %c0_i32_0 : i32, i32
  }
  func.func @transform_9(%arg0: i32, %arg1: memref<2xi32, #tpu.memory_space<smem>>) -> (i32, i32) {
    %c0_i32 = arith.constant 0 : i32
    %c0_i32_0 = arith.constant 0 : i32
    %c0_i32_1 = arith.constant 0 : i32
    return %c0_i32, %c0_i32_0 : i32, i32
  }
  func.func @transform_10(%arg0: i32, %arg1: memref<2xi32, #tpu.memory_space<smem>>) -> (i32, i32) {
    %c0_i32 = arith.constant 0 : i32
    %c0_i32_0 = arith.constant 0 : i32
    %c0_i32_1 = arith.constant 0 : i32
    return %c0_i32, %c0_i32_0 : i32, i32
  }
  func.func @transform_11(%arg0: i32, %arg1: memref<2xi32, #tpu.memory_space<smem>>) -> (i32, i32) {
    %c0_i32 = arith.constant 0 : i32
    %c0_i32_0 = arith.constant 0 : i32
    %c0_i32_1 = arith.constant 0 : i32
    return %c0_i32, %c0_i32_0 : i32, i32
  }
  func.func @transform_12(%arg0: i32, %arg1: memref<2xi32, #tpu.memory_space<smem>>) -> (i32, i32) {
    %c0_i32 = arith.constant 0 : i32
    %c0_i32_0 = arith.constant 0 : i32
    %c0_i32_1 = arith.constant 0 : i32
    return %c0_i32, %c0_i32_0 : i32, i32
  }
  func.func @transform_13(%arg0: i32, %arg1: memref<2xi32, #tpu.memory_space<smem>>) -> (i32, i32) {
    %c0_i32 = arith.constant 0 : i32
    %c0_i32_0 = arith.constant 0 : i32
    %c0_i32_1 = arith.constant 0 : i32
    return %c0_i32, %c0_i32_0 : i32, i32
  }
  func.func @transform_14(%arg0: i32, %arg1: memref<2xi32, #tpu.memory_space<smem>>) -> (i32, i32, i32) {
    %c0_i32 = arith.constant 0 : i32
    %c0_i32_0 = arith.constant 0 : i32
    %c0_i32_1 = arith.constant 0 : i32
    return %arg0, %c0_i32, %c0_i32_0 : i32, i32, i32
  }
}

</mosaic_0001>

<bundles_post_ra>
// kernel: tpu_custom_call.1
= control target key start
LH: loop header
LB: loop body
LE: loop exit
PB: predicated region body
PF: predicated region fallthrough
CT: control target
= control target key end

     0   :  { %s3881_s0 = inlined_call_operand.hbm [shape: s32[2], index: 0, kind: input, shape index: {}]   ;;  %s3882_s1 = inlined_call_operand.hbm [shape: f32[2,8,128], index: 1, kind: input, shape index: {}]   ;;  %s3883_s2 = inlined_call_operand.hbm [shape: f32[8,128], index: 2, kind: input, shape index: {}]   ;;  %s3884_s3 = inlined_call_operand.hbm [shape: bf16[128,384], index: 3, kind: input, shape index: {}]   ;;  %s3885_s4 = inlined_call_operand.vmem [shape: f32[1,384], index: 4, kind: input, shape index: {}]   ;;  %s3886_s5 = inlined_call_operand.hbm [shape: bf16[128,128], index: 5, kind: input, shape index: {}]   ;;  %s3887_s6 = inlined_call_operand.vmem [shape: f32[1,128], index: 6, kind: input, shape index: {}]   ;;  %s3888_s7 = inlined_call_operand.vmem [shape: f32[1,128], index: 7, kind: input, shape index: {}]   ;;  %s3889_s8 = inlined_call_operand.vmem [shape: f32[1,128], index: 8, kind: input, shape index: {}]   ;;  %s3890_s9 = inlined_call_operand.vmem [shape: f32[1,128], index: 9, kind: input, shape index: {}]   ;;  %s3891_s10 = inlined_call_operand.vmem [shape: f32[1,128], index: 10, kind: input, shape index: {}]   ;;  %s3892_s11 = inlined_call_operand.hbm [shape: bf16[128,128], index: 11, kind: input, shape index: {}]   ;;  %s3893_s12 = inlined_call_operand.vmem [shape: f32[1,128], index: 12, kind: input, shape index: {}]   ;;  %s3894_s13 = inlined_call_operand.hbm [shape: bf16[128,128], index: 13, kind: input, shape index: {}]   ;;  %s3895_s14 = inlined_call_operand.vmem [shape: f32[1,128], index: 14, kind: input, shape index: {}]   ;;  %s3896_s15 = inlined_call_operand.hbm [shape: f32[2,8,128], index: 15, kind: output, shape index: {}]  }
   0x1   :  { %3905 = sst [smem:[#allocation22_spill]] %s3883_s2  ;;  %s2930_s20 = scalar_lea.hbm %s3881_s0, 16 }
   0x2   :  { %3906 = sst [smem:[#allocation23_spill]] %s3886_s5  ;;  %p2931_p0 = scmp.ne.s32.totalorder %s3881_s0, %s2930_s20 }
   0x3   :  { %3907 = sst [smem:[#allocation24_spill]] %s3889_s8  ;;  %p2934_p1 = scmp.lt.u32.totalorder %s2930_s20, %s3881_s0 }
   0x4   :  { %3908 = sst [smem:[#allocation25_spill]] %s3890_s9 }
   0x5   :  { %3909 = sst [smem:[#allocation26_spill]] %s3891_s10  ;;  %p2936_p2 = pnand %p2934_p1, %p2931_p0 }
   0x6   :  { %3910 = sst [smem:[#allocation27_spill]] %s3893_s12 }
   0x7   :  { %3911 = sst [smem:[#allocation28_spill]] %s3895_s14 }
   0x8   :  { %3912 = sst [smem:[#allocation29_spill]] %s3896_s15 }
   0x9   :  { %2939 = shalt.err (!%p2936_p2)  }
   0xa   :  { %s3192_s25 = smov [#allocation3]  }
   0xb   :  { %21 = dma.hbm_to_smem %s3881_s0, 16, %s3192_s25, [#allocation2] }
   0xc   :  { %3154 = dma.done.wait [#allocation2], 16 }
   0xd   :  { %3155 = vsyncadd [#allocation2], 4294967280 }
   0xe   :  { %23 = sfence }
   0xf   :  { %24 = vsyncpa [#allocation5], 0 }
  0x10   :  { %26 = vsyncpa [#allocation5 + $0x1], 0 }
  0x11   :  { %27 = vsyncpa [#allocation8], 0 }
  0x12   :  { %28 = vsyncpa [#allocation11], 0 }
  0x13   :  { %29 = vsyncpa [#allocation14], 0 }
  0x14   :  { %30 = vsyncpa [#allocation6], 0 }
  0x15   :  { %32 = vsyncpa [#allocation6 + $0x1], 0  ;;  %s3304_s28 = smov 0   ;;  %s3306_s29 = smov 0  }
  0x16   :  { %s3308_s30 = smov 0   ;;  %s3310_s16 = smov 0  }
  0x17 LB: > { %s3193_s0 = smov [#allocation7]   ;;  %s3325_s18 = sadd.s32 4294967295, %s3190_s16   ;;  %s3190_s16 = sphi %s3310_s16, %s3946_s16   ;;  %s3186_s30 = sphi %s3308_s30, %s3945_s30   ;;  %s3182_s29 = sphi %s3306_s29, %s3944_s29   ;;  %s3178_s28 = sphi %s3304_s28, %s3943_s28  }
  0x18   : > { %s381_s17 = sshll.u32 %s3193_s0, 4  ;;  %p2479_p3 = scmp.ge.s32.totalorder %s3190_s16, 1  ;;  %s382_s17 = int_to_ptr.vmem [resolvable:$true] %s381_s17 }
  0x19   : > { %p3898_p4 = scmp.eq.s32.totalorder %s3325_s18, 0  ;;  %p368_p5 = scmp.lt.s32.totalorder %s3190_s16, 3 }
  0x1a   : > { %s3194_s20 = smov [#allocation10]   ;;  %s3195_s23 = smov [#allocation9]  }
  0x1b   : > { %p3330_p6 = pnand %p2479_p3, %p368_p5  ;;  %s407_s21 = sshll.u32 %s3194_s20, 4  ;;  %s3337_s21 = int_to_ptr.vmem [resolvable:$true] %s407_s21 }
  0x1c   : > { %s391_s24 = sshll.u32 %s3195_s23, 4  ;;  %s3915_s2 = sld [smem:[#allocation22_spill]]  ;;  %s3345_s24 = int_to_ptr.vmem [resolvable:$true] %s391_s24 }
  0x1d   : > { %s3913_s19 = scalar_select %p3330_p6, 1, 0 }
  0x1e   : > { %p2768_p8 = pneg %p3330_p6 }
  0x20   : > { %p3341_p9 = pnand %p2768_p8, %p3898_p4 }
  0x22   : > { %s2940_s27 = scalar_lea.hbm %s3915_s2, 128  ;;  %p3355_p11 = pneg %p3341_p9 }
  0x23   : > { %p2941_p10 = scmp.ne.s32.totalorder %s3915_s2, %s2940_s27  ;;  %p2947_p0 = scmp.lt.u32.totalorder %s2940_s27, %s3915_s2 }
  0x25   : > { %p2943_p12 = pnand %p3355_p11, %p2941_p10 }
  0x27   : > { %p2944_p13 = pneg %p2943_p12 }
  0x29   : > { %p2949_p1 = pnand %p2947_p0, %p2944_p13 }
  0x2b   : > { %2952 = shalt.err (!%p2949_p1)
}
  0x2c   : > { %s2953_s25 = scalar_lea.vmem %s382_s17, 128  ;;  %p2961_p8 = scmp.lt.s32.totalorder %s382_s17, %s382_s17 }
  0x2d   : > { %p2954_p2 = scmp.ne.s32.totalorder %s382_s17, %s2953_s25  ;;  %p2962_p7 = scmp.lt.s32.totalorder %s2953_s25, %s2953_s25 }
  0x2f   : > { %p2956_p3 = pnand %p2954_p2, %p3355_p11  ;;  %p2963_p4 = por %p2962_p7, %p2961_p8 }
  0x31   : > { %p2957_p5 = pneg %p2956_p3 }
  0x33   : > { %p2964_p6 = pnand %p2963_p4, %p2957_p5 }
  0x35   : > { %2967 = shalt.err (!%p2964_p6)
}
  0x36   : > { %2771 = dma.hbm_to_vmem [thread:$0]  (!%p3341_p9), %s3915_s2, 128, %s382_s17, [#allocation8]  }
  0x37   : > { %s3917_s5 = sld [smem:[#allocation23_spill]] }
  0x3d   : > { %s2968_s0 = scalar_lea.hbm %s3917_s5, 1024 }
  0x3e   : > { %p2969_p10 = scmp.ne.s32.totalorder %s3917_s5, %s2968_s0  ;;  %p2975_p4 = scmp.lt.u32.totalorder %s2968_s0, %s3917_s5 }
  0x40   : > { %p2971_p12 = pnand %p2969_p10, %p3355_p11 }
  0x42   : > { %p2972_p7 = pneg %p2971_p12 }
  0x44   : > { %p2977_p6 = pnand %p2975_p4, %p2972_p7 }
  0x46   : > { %2980 = shalt.err (!%p2977_p6)
}
  0x47   : > { %s2981_s17 = scalar_lea.vmem %s3337_s21, 1024  ;;  %p2989_p2 = scmp.lt.s32.totalorder %s3337_s21, %s3337_s21 }
  0x48   : > { %p2982_p13 = scmp.ne.s32.totalorder %s3337_s21, %s2981_s17  ;;  %p2990_p3 = scmp.lt.s32.totalorder %s2981_s17, %s2981_s17 }
  0x4a   : > { %p2984_p0 = pnand %p2982_p13, %p3355_p11  ;;  %p2991_p5 = por %p2990_p3, %p2989_p2 }
  0x4c   : > { %p2985_p1 = pneg %p2984_p0 }
  0x4e   : > { %p2992_p8 = pnand %p2991_p5, %p2985_p1 }
  0x50   : > { %2995 = shalt.err (!%p2992_p8)
}
  0x51   : > { %s3900_s9 = smov 64   ;;  %s3902_s14 = smov 4  }
  0x52   : > { %2777 = dma.hbm_to_vmem [thread:$0]  (!%p3341_p9), %s3917_s5, 1024, %s3337_s21, [#allocation11], %s3900_s9, %s3900_s9, %s3902_s14  }
  0x53   : > { %s2996_s0 = scalar_lea.hbm %s3884_s3, 3072 }
  0x54   : > { %p2997_p10 = scmp.ne.s32.totalorder %s3884_s3, %s2996_s0  ;;  %p3003_p4 = scmp.lt.u32.totalorder %s2996_s0, %s3884_s3 }
  0x56   : > { %p2999_p12 = pnand %p2997_p10, %p3355_p11 }
  0x58   : > { %p3000_p7 = pneg %p2999_p12 }
  0x5a   : > { %p3005_p6 = pnand %p3003_p4, %p3000_p7 }
  0x5c   : > { %3008 = shalt.err (!%p3005_p6)
}
  0x5d   : > { %s3009_s21 = scalar_lea.vmem %s3345_s24, 3072  ;;  %p3017_p2 = scmp.lt.s32.totalorder %s3345_s24, %s3345_s24 }
  0x5e   : > { %p3010_p13 = scmp.ne.s32.totalorder %s3345_s24, %s3009_s21  ;;  %p3018_p3 = scmp.lt.s32.totalorder %s3009_s21, %s3009_s21 }
  0x60   : > { %p3012_p0 = pnand %p3010_p13, %p3355_p11  ;;  %p3019_p5 = por %p3018_p3, %p3017_p2 }
  0x62   : > { %p3013_p1 = pneg %p3012_p0 }
  0x64   : > { %p3020_p8 = pnand %p3019_p5, %p3013_p1 }
  0x66   : > { %3023 = shalt.err (!%p3020_p8)
}
  0x67   : > { %s3198_s15 = smov 192   ;;  %s3199_s2 = smov 12  }
  0x68   : > { %2774 = dma.hbm_to_vmem [thread:$0]  (!%p3341_p9), %s3884_s3, 3072, %s3345_s24, [#allocation8], %s3198_s15, %s3198_s15, %s3199_s2  }
  0x69   : > { %s3200_s27 = smov [#allocation12]   ;;  %s3201_s23 = smov [#allocation13]  }
  0x6a   : > { %s435_s0 = sshll.u32 %s3200_s27, 4  ;;  %s451_s25 = sshll.u32 %s3201_s23, 4  ;;  %s436_s0 = int_to_ptr.vmem [resolvable:$true] %s435_s0  ;;  %s452_s25 = int_to_ptr.vmem [resolvable:$true] %s451_s25 }
  0x6b   : > { %s3024_s9 = scalar_lea.hbm %s3892_s11, 1024 }
  0x6c   : > { %p3025_p10 = scmp.ne.s32.totalorder %s3892_s11, %s3024_s9  ;;  %p3031_p4 = scmp.lt.u32.totalorder %s3024_s9, %s3892_s11 }
  0x6e   : > { %p3027_p12 = pnand %p3025_p10, %p3355_p11 }
  0x70   : > { %p3028_p7 = pneg %p3027_p12 }
  0x72   : > { %p3033_p6 = pnand %p3031_p4, %p3028_p7 }
  0x74   : > { %3036 = shalt.err (!%p3033_p6)
}
  0x75   : > { %s3037_s24 = scalar_lea.vmem %s436_s0, 1024  ;;  %p3045_p2 = scmp.lt.s32.totalorder %s436_s0, %s436_s0 }
  0x76   : > { %p3038_p13 = scmp.ne.s32.totalorder %s436_s0, %s3037_s24  ;;  %p3046_p3 = scmp.lt.s32.totalorder %s3037_s24, %s3037_s24 }
  0x78   : > { %p3040_p0 = pnand %p3038_p13, %p3355_p11  ;;  %p3047_p5 = por %p3046_p3, %p3045_p2 }
  0x7a   : > { %p3041_p1 = pneg %p3040_p0 }
  0x7c   : > { %p3048_p8 = pnand %p3047_p5, %p3041_p1 }
  0x7e   : > { %3051 = shalt.err (!%p3048_p8)
}
  0x7f   : > { %s3918_s5 = smov 4   ;;  %s3919_s14 = smov 64  }
  0x80   : > { %2780 = dma.hbm_to_vmem [thread:$0]  (!%p3341_p9), %s3892_s11, 1024, %s436_s0, [#allocation11], %s3919_s14, %s3919_s14, %s3918_s5  }
  0x81   : > { %s3052_s2 = scalar_lea.hbm %s3894_s13, 1024 }
  0x82   : > { %p3053_p10 = scmp.ne.s32.totalorder %s3894_s13, %s3052_s2  ;;  %p3059_p4 = scmp.lt.u32.totalorder %s3052_s2, %s3894_s13 }
  0x84   : > { %p3055_p12 = pnand %p3053_p10, %p3355_p11 }
  0x86   : > { %p3056_p7 = pneg %p3055_p12 }
  0x88   : > { %p3061_p6 = pnand %p3059_p4, %p3056_p7 }
  0x8a   : > { %3064 = shalt.err (!%p3061_p6)
}
  0x8b   : > { %s3065_s17 = scalar_lea.vmem %s452_s25, 1024  ;;  %p3073_p2 = scmp.lt.s32.totalorder %s452_s25, %s452_s25 }
  0x8c   : > { %p3066_p13 = scmp.ne.s32.totalorder %s452_s25, %s3065_s17  ;;  %p3074_p3 = scmp.lt.s32.totalorder %s3065_s17, %s3065_s17 }
  0x8e   : > { %p3068_p0 = pnand %p3066_p13, %p3355_p11  ;;  %p3075_p5 = por %p3074_p3, %p3073_p2 }
  0x90   : > { %p3069_p1 = pneg %p3068_p0 }
  0x92   : > { %p3076_p8 = pnand %p3075_p5, %p3069_p1 }
  0x94   : > { %3079 = shalt.err (!%p3076_p8)
}
  0x95   : > { %2783 = dma.hbm_to_vmem [thread:$0]  (!%p3341_p9), %s3894_s13, 1024, %s452_s25, [#allocation14], %s3919_s14, %s3919_s14, %s3918_s5  }
  0x96   : > { %s2478_s22 = sadd.s32 4294967294, %s3190_s16   ;;  %s3464_s20 = sadd.s32 1, %s3190_s16  }
  0x97   : > { %s45_s24 = sadd.s32 1, %s3186_s30  ;;  %s42_s8 = ssub.s32 %s3190_s16, %s3464_s20 }
  0x98   : > { %p52_p11 = scmp.ne.s32.totalorder %s3186_s30, %s3182_s29  ;;  %p43_p10 = scmp.eq.s32.totalorder %s42_s8, 0 }
  0x99   : > { %p53_p12 = scmp.eq.s32.totalorder %s3190_s16, 0  ;;  %p58_p7 = scmp.ne.s32.totalorder %s3182_s29, %s3178_s28 }
  0x9a   : > { %p355_p4 = scmp.eq.s32.totalorder %s3325_s18, 1  ;;  %p3920_p13 = scmp.eq.s32.totalorder %s3325_s18, 0 }
  0x9b   : > { %s3476_s12 = scalar_select %p43_p10, %s3186_s30, %s45_s24  }
  0x9c   : > { %p54_p6 = por %p53_p12, %p52_p11  ;;  %p3480_p0 = por %p3920_p13, %p58_p7 }
  0x9d   : > { %p3484_p9 = por %p355_p4, %p52_p11  ;;  %p361_p1 = scmp.eq.s32.totalorder %s2478_s22, 1 }
  0x9e   : > { %p2797_p2 = scmp.lt.s32.totalorder %s3190_s16, 2  ;;  %s468_s5 = sand.u32 1, %s3186_s30  }
  0x9f   : > { %s3922_s25 = scalar_select %p3484_p9, 1, 0 }
  0xa0   : > { %p3490_p3 = por %p361_p1, %p58_p7  ;;  %s2486_s15 = sshll.u32 %s468_s5, 3 }
  0xa1   : > { %s2487_s2 = sshll.u32 %s3190_s16, 7  ;;  %s472_s23 = scalar_lea.vmem [#allocation4], %s2486_s15 }
  0xa2   : > { %s3923_s14 = scalar_select %p3490_p3, 1, 0 }
  0xa3   : > { %s3498_s27 = scalar_lea.hbm %s3882_s1, %s2487_s2  ;;  %s479_s17 = sshll.u32 %s472_s23, 4  ;;  %s3504_s17 = int_to_ptr.vmem [resolvable:$true] %s479_s17 }
  0xa4   : > { %p3500_p5 = pnand %p2797_p2, %p54_p6  ;;  %s469_s21 = scalar_lea.sflag [#allocation5], %s468_s5 }
  0xa5   : > { %s3080_s22 = scalar_lea.hbm %s3498_s27, 128  ;;  %s3085_s15 = scalar_lea.hbm %s3882_s1, 256 }
  0xa6   : > { %p3081_p8 = scmp.ne.s32.totalorder %s3498_s27, %s3080_s22  ;;  %p3082_p11 = pneg %p3500_p5 }
  0xa7   : > { %p3086_p7 = scmp.lt.u32.totalorder %s3498_s27, %s3882_s1  ;;  %p3087_p4 = scmp.lt.u32.totalorder %s3085_s15, %s3080_s22 }
  0xa8   : > { %p3083_p10 = pnand %p3082_p11, %p3081_p8  ;;  %p3089_p13 = scmp.lt.u32.totalorder %s3080_s22, %s3498_s27 }
  0xa9   : > { %p3088_p6 = por %p3087_p4, %p3086_p7 }
  0xaa   : > { %p3084_p12 = pneg %p3083_p10 }
  0xab   : > { %p3090_p1 = por %p3089_p13, %p3088_p6 }
  0xad   : > { %p3091_p2 = pnand %p3090_p1, %p3084_p12 }
  0xaf   : > { %3094 = shalt.err (!%p3091_p2)
}
  0xb0   : > { %s3095_s5 = scalar_lea.vmem %s3504_s17, 128  ;;  %s3202_s10 = smov [#allocation4]  }
  0xb1   : > { %p3096_p8 = scmp.ne.s32.totalorder %s3504_s17, %s3095_s5  ;;  %s3100_s23 = sshll.u32 %s3202_s10, 4  ;;  %s3101_s23 = int_to_ptr.vmem [resolvable:$false] %s3100_s23 }
  0xb2   : > { %s3102_s24 = scalar_lea.vmem %s3101_s23, 256  ;;  %p3103_p9 = scmp.lt.s32.totalorder %s3504_s17, %s3101_s23 }
  0xb3   : > { %p3098_p10 = pnand %p3096_p8, %p3082_p11  ;;  %p3104_p7 = scmp.lt.s32.totalorder %s3102_s24, %s3095_s5 }
  0xb5   : > { %p3099_p3 = pneg %p3098_p10  ;;  %p3105_p4 = por %p3104_p7, %p3103_p9 }
  0xb7   : > { %p3106_p6 = pnand %p3105_p4, %p3099_p3 }
  0xb9   : > { %3109 = shalt.err (!%p3106_p6)
}
  0xba   : > { %2787 = dma.hbm_to_vmem [thread:$0]  (!%p3500_p5), %s3498_s27, 128, %s3504_s17, %s469_s21  }
  0xbb   : > { %p3925_p12 = scmp.ne.s32.totalorder %s3913_s19, 0 }
  0xbc   : > { %s3534_s22 = sand.u32 (!%p3925_p12), 1, %s3182_s29  }
  0xbd   : > { %488 = sbr.rel (%p3925_p12) target bundleno = 2852 (0xb24), region = 76  ;;  %s2489_s8 = sshll.u32 (!%p3925_p12), %s3534_s22, 3 }
  0xbe   : > { %s491_s15 = scalar_lea.sflag (!%p3925_p12), [#allocation5], %s3534_s22  ;;  %s494_s2 = scalar_lea.vmem (!%p3925_p12), [#allocation4], %s2489_s8 }
  0xc4   : > { %3157 = dma.done.wait (%p3480_p0), %s491_s15, 128  }
  0xc5   : > { %3159 = vsyncadd (%p3480_p0), %s491_s15, 4294967168  ;;  %p3926_p9 = scmp.eq.s32.totalorder %s3325_s18, 0 }
  0xc7   : > { %3161 = dma.done.wait (%p3926_p9), [#allocation8], 3200   ;;  %p3927_p3 = pmov %p3926_p9 }
  0xc9   : > { %3163 = vsyncadd (%p3927_p3), [#allocation8], 4294964096  ;;  %p3928_p5 = pmov %p3927_p3 }
  0xca   : > { %p3929_p11 = pmov %p3927_p3 }
  0xcb   : > { %3165 = dma.done.wait (%p3928_p5), [#allocation11], 2048  }
  0xcc   : > { %3167 = vsyncadd (%p3929_p11), [#allocation11], 4294965248  ;;  %p3930_p13 = pmov %p3927_p3 }
  0xcd   : > { %p3931_p1 = pmov %p3927_p3 }
  0xce   : > { %3169 = dma.done.wait (%p3930_p13), [#allocation14], 1024  }
  0xcf   : > { %3171 = vsyncadd (%p3931_p1), [#allocation14], 4294966272  ;;  %v3203_v0 = vmov 0   ;;  %v2854_v1 = vld [vmem:[#allocation9 + $0x4] ss:$12 sps:$4 sm:$0xff]   ;;  %v567_v17 = vld [vmem:[#allocation7] sm:$0xff]  ;;  %v560_v26 = vlaneseq }
  0xd0   : > { %784 = vmatprep.mubr.bf16.mxu0 %v3203_v0  ;;  %v2856_v2 = vld [vmem:[#allocation9] ss:$12 sps:$4 sm:$0xff]   ;;  %752 = vmatprep.subr.bf16.mxu0 %v2854_v1  ;;  %v2857_v3 = vld [vmem:[#allocation9 + $0x1c] ss:$12 sps:$4 sm:$0xff]   ;;  %v2859_v4 = vld [vmem:[#allocation9 + $0x18] ss:$12 sps:$4 sm:$0xff]  }
  0xd1   : > { %753 = vmatpush1.bf16.msra.mxu0 %v2856_v2  ;;  %v2860_v5 = vld [vmem:[#allocation9 + $0x34] ss:$12 sps:$4 sm:$0xff]   ;;  %v2862_v6 = vld [vmem:[#allocation9 + $0x30] ss:$12 sps:$4 sm:$0xff]   ;;  %v2863_v7 = vld [vmem:[#allocation9 + $0x4c] ss:$12 sps:$4 sm:$0xff]  }
  0xd2   : > { %754 = vmatprep.subr.bf16.mxu0 %v2857_v3  ;;  %v565_v8 = vld [vmem:[%s494_s2] sm:$0xff]  ;;  %v2871_v14 = vld [vmem:[#allocation9 + $0x78] ss:$12 sps:$4 sm:$0xff]   ;;  %v3204_v23 = vmov 0.0   ;;  %v3567_v27 = vshrl.u32 %v560_v26, 7  ;;  %s3205_s27 = smov 32  }
  0xd3   : > { %v2865_v9 = vld [vmem:[#allocation9 + $0x48] ss:$12 sps:$4 sm:$0xff]   ;;  %v2866_v10 = vld [vmem:[#allocation9 + $0x64] ss:$12 sps:$4 sm:$0xff]   ;;  %v566_v11 = vmul.f32 5.656854, %v565_v8  ;;  %2616 = vmatprep.subr.bf16.mxu1 %v3204_v23 }
  0xd4   : > { %v2868_v12 = vld [vmem:[#allocation9 + $0x60] ss:$12 sps:$4 sm:$0xff]   ;;  %v2869_v13 = vld [vmem:[#allocation9 + $0x7c] ss:$12 sps:$4 sm:$0xff]   ;;  %v2880_v25 = vld [vmem:[#allocation9 + $0x38] ss:$12 sps:$4 sm:$0xff]  }
  0xd5   : > { %755 = vmatpush1.bf16.msra.mxu0 %v2859_v4  ;;  %v2872_v15 = vld [vmem:[#allocation9 + $0x94] ss:$12 sps:$4 sm:$0xff]   ;;  %v2874_v16 = vld [vmem:[#allocation9 + $0x90] ss:$12 sps:$4 sm:$0xff]   ;;  %v2875_v18 = vld [vmem:[#allocation9 + $0xac] ss:$12 sps:$4 sm:$0xff]   ;;  %v3557_v20 = vadd.f32 %v567_v17, %v566_v11 }
  0xd6   : > { %756 = vmatprep.subr.bf16.mxu0 %v2860_v5  ;;  %v2877_v19 = vld [vmem:[#allocation9 + $0xa8] ss:$12 sps:$4 sm:$0xff]   ;;  %v2879_v24 = vld [vmem:[#allocation9 + $0x20] ss:$12 sps:$4 sm:$0xff]   ;;  %v2881_v28 = vld [vmem:[#allocation9 + $0x50] ss:$12 sps:$4 sm:$0xff]  }
  0xd7   : > { %v574_v21 = vpack.c.bf16 %v3557_v20, %v3557_v20  ;;  %v2878_v22 = vld [vmem:[#allocation9 + $0x8] ss:$12 sps:$4 sm:$0xff]   ;;  %v615_v29 = vsub.s32 1, %v3567_v27  ;;  %v3573_v30 = vld [vmem:[%s3885_s4] sm:$0x7]  ;;  %v611_v31 = vsub.s32 0, %v3567_v27 }
  0xd8   : > { %2617 = vmatpush3.bf16.msra.mxu1 %v2878_v22  ;;  %v2882_v33 = vld [vmem:[#allocation9 + $0x68] ss:$12 sps:$4 sm:$0xff]   ;;  %s3206_s17 = smov 96   ;;  %v2883_v42 = vld [vmem:[#allocation9 + $0x80] ss:$12 sps:$4 sm:$0xff]   ;;  %s3207_s0 = smov 64  }
  0xd9   : > { %757 = vmatpush1.bf16.msra.mxu0 %v2862_v6  ;;  %2618 = vmatprep.subr.bf16.mxu1 %v3204_v23  ;;  %v616_v32 = vrot.slane %v3573_v30, %v615_v29  ;;  %v612_v34 = vrot.slane %v3573_v30, %v611_v31  ;;  %v2884_v44 = vld [vmem:[#allocation9 + $0x98] ss:$12 sps:$4 sm:$0xff]   ;;  %v2885_v45 = vld [vmem:[#allocation9 + $0xb0] ss:$12 sps:$4 sm:$0xff]   ;;  %vm3208_vm0 = vmmov 0   ;;  %vm1340_vm1 = vcmask 261120  }
  0xda   : > { %758 = vmatprep.subr.bf16.mxu0 %v2863_v7  ;;  %2632 = vmatprep.mubr.msk.bf16.mxu1 %vm3208_vm0, %v3204_v23  ;;  %v3209_v46 = vmov 1983009808   ;;  %v3210_v48 = vmov 1934713408   ;;  %s569_s21 = sld [smem:[#allocation3 + %s3325_s18]]  ;;  %vm1535_vm3 = vcmask 64512  }
  0xdb   : > { %v844_v47 = vunpack.c.l.s4 %v3209_v46  ;;  %v861_v49 = vunpack.c.l.s4 %v3210_v48  ;;  %vm1591_vm4 = vcmask 1043456   ;;  %vm1944_vm5 = vcmask 523264   ;;  %s3934_s2 = sld [smem:[#allocation24_spill]]  ;;  %s3937_s10 = sld [smem:[#allocation25_spill]] }
  0xdc   : > { %2619 = vmatpush3.bf16.msra.mxu1 %v2879_v24  ;;  %vm1947_vm6 = vcmask 785408   ;;  %s3938_s15 = sld [smem:[#allocation26_spill]]  ;;  %s558_s19 = scalar_lea.vmem [#allocation15], %s2489_s8 }
  0xdd   : > { %759 = vmatpush1.bf16.msra.mxu0 %v2865_v9  ;;  %2620 = vmatprep.subr.bf16.mxu1 %v3204_v23  ;;  %v845_v50 = vunpack.c.0.s8 %v844_v47  ;;  %v862_v51 = vunpack.c.0.s8 %v861_v49  ;;  %s2360_s9 = sshll.u32 %s558_s19, 4  ;;  %s2347_s26 = scalar_lea.sflag [#allocation6], %s3534_s22  ;;  %s3839_s9 = int_to_ptr.vmem [resolvable:$true] %s2360_s9 }
  0xde   : > { %760 = vmatprep.subr.bf16.mxu0 %v2866_v10  ;;  %s3110_s5 = scalar_lea.vmem %s3839_s9, 128  ;;  %p3940_p2 = scmp.ne.s32.totalorder %s3922_s25, 0 }
  0xdf   : > { %v3596_v52 = vsub.s32 %v845_v50, %v3567_v27  ;;  %v3599_v55 = vsub.s32 %v862_v51, %v3567_v27  ;;  %p3111_p0 = scmp.ne.s32.totalorder %s3839_s9, %s3110_s5 }
  0xe0   : > { %2621 = vmatpush3.bf16.msra.mxu1 %v2880_v25 }
  0xe1   : > { %761 = vmatpush1.bf16.msra.mxu0 %v2868_v12  ;;  %2622 = vmatprep.subr.bf16.mxu1 %v3204_v23  ;;  %p3112_p8 = pnand %p3111_p0, %p3940_p2 }
  0xe2   : > { %762 = vmatprep.subr.bf16.mxu0 %v2869_v13 }
  0xe3   : > { %p3113_p10 = pneg %p3112_p8 }
  0xe4   : > { %2623 = vmatpush3.bf16.msra.mxu1 %v2881_v28 }
  0xe5   : > { %763 = vmatpush1.bf16.msra.mxu0 %v2871_v14  ;;  %2624 = vmatprep.subr.bf16.mxu1 %v3204_v23 }
  0xe6   : > { %764 = vmatprep.subr.bf16.mxu0 %v2872_v15 }
  0xe8   : > { %2625 = vmatpush3.bf16.msra.mxu1 %v2882_v33 }
  0xe9   : > { %765 = vmatpush1.bf16.msra.mxu0 %v2874_v16  ;;  %2626 = vmatprep.subr.bf16.mxu1 %v3204_v23 }
  0xea   : > { %766 = vmatprep.subr.bf16.mxu0 %v2875_v18 }
  0xec   : > { %2627 = vmatpush3.bf16.msra.mxu1 %v2883_v42 }
  0xed   : > { %767 = vmatpush1.bf16.msra.mxu0 %v2877_v19  ;;  %2628 = vmatprep.subr.bf16.mxu1 %v3204_v23 }
  0xee   : > { %2660 = vmatprep.subr.bf16.mxu0 %v3204_v23 }
  0xf0   : > { %785 = vmatmul.mubr.bf16.vlgmr.msra.gmra.mrb[0].mxu0 %v574_v21  ;;  %2629 = vmatpush3.bf16.msra.mxu1 %v2884_v44 }
  0xf1   : > { %2630 = vmatprep.subr.bf16.mxu1 %v3204_v23  ;;  %2662 = vmatprep.mubr.msk.bf16.mxu0 %vm3208_vm0, %v3204_v23 }
  0xf4   : > { %2631 = vmatpush3.bf16.msra.mxu1 %v2885_v45 }
  0xf5   : > { %2636 = vmatprep.subr.bf16.mxu1 %v3204_v23 }
  0xf7   : > { %2633 = vmatmul.mubr.bf16.vlgmr.msra.gmra.mrb[0].mxu1 %v574_v21 }
  0xf8   : > { %2638 = vmatprep.mubr.msk.bf16.mxu1 %vm3208_vm0, %v3204_v23 }
 0x1c3   : > { %v786_v35 = vpop.f32.mrb[0].mxu0 }
 0x1c4   : > { %v788_v36 = vpop.f32.mrb[1].mxu0  ;;  %v787_v40 = vadd.f32 %v786_v35, %v612_v34 }
 0x1c5   : > { %v789_v37 = vadd.f32 %v788_v36, %v616_v32  ;;  %v790_v38 = vpop.f32.mrb[2].mxu0 }
 0x1c6   : > { %v791_v39 = vpop.f32.mrb[3].mxu0  ;;  %v833_v43 = vpack.c.bf16 %v787_v40, %v787_v40 }
 0x1c7   : > { %v834_v41 = vpack.c.bf16 %v789_v37, %v789_v37 }
 0x1c8   : > { %v849_v9 = vrot.slane %v833_v43, %v3596_v52 }
 0x1c9   : > { %1009 = vrot.lane.b32.xlu1 %v834_v41, %s3205_s27  ;;  %1005 = vrot.lane.b32.xlu0 %v834_v41, %s3206_s17  ;;  %v1017_v2 = vrot.slane %v834_v41, %v3596_v52 }
 0x1cd   : > { %1007 = vrot.lane.b32.xlu0 %v834_v41, %s3207_s0  ;;  %837 = vrot.lane.b32.xlu1 %v833_v43, %s3206_s17 }
 0x1d1   : > { %839 = vrot.lane.b32.xlu0 %v833_v43, %s3207_s0  ;;  %841 = vrot.lane.b32.xlu1 %v833_v43, %s3205_s27 }
 0x23b   : > { %v1010_v53 = vpop.permute.xlu1 %1009  ;;  %v1006_v54 = vpop.permute.xlu0 %1005 }
 0x23c   : > { %v1059_v56 = vrot.slane %v1010_v53, %v3596_v52  ;;  %v1051_v57 = vrot.slane %v1006_v54, %v3596_v52 }
 0x23e   : > { %v1060_v58 = vcombine.low %v1051_v57, %v1059_v56  ;;  %v1061_v59 = vcombine.high %v1051_v57, %v1059_v56 }
 0x23f   : > { %v1008_v60 = vpop.permute.xlu0 %1007  ;;  %v838_v61 = vpop.permute.xlu1 %837 }
 0x240   : > { %v1068_v62 = vrot.slane %v1060_v58, %v3599_v55  ;;  %v1075_v63 = vrot.slane %v1061_v59, %v3599_v55  ;;  %v1025_v1 = vrot.slane %v1008_v60, %v3596_v52  ;;  %v883_v7 = vrot.slane %v838_v61, %v3596_v52 }
 0x242   : > { %v1076_v3 = vcombine.high %v1068_v62, %v3203_v0  ;;  %v1077_v4 = vcombine.high %v1075_v63, %v3203_v0  ;;  %v1026_v5 = vcombine.low %v1017_v2, %v1025_v1  ;;  %v1027_v6 = vcombine.high %v1017_v2, %v1025_v1 }
 0x243   : > { %v840_v8 = vpop.permute.xlu0 %839  ;;  %v842_v10 = vpop.permute.xlu1 %841  ;;  %v1083_v11 = vshrl.u32 %v1068_v62, 16  ;;  %v1099_v12 = vshrl.u32 %v1075_v63, 16 }
 0x244   : > { %v857_v13 = vrot.slane %v840_v8, %v3596_v52  ;;  %v891_v14 = vrot.slane %v842_v10, %v3596_v52  ;;  %v1091_v15 = vshrl.u32 %v1076_v3, 16  ;;  %v1107_v16 = vshrl.u32 %v1077_v4, 16 }
 0x245   : > { %v1034_v17 = vrot.slane %v1026_v5, %v3599_v55  ;;  %v1041_v18 = vrot.slane %v1027_v6, %v3599_v55 }
 0x246   : > { %v858_v19 = vcombine.low %v849_v9, %v857_v13  ;;  %v859_v21 = vcombine.high %v849_v9, %v857_v13  ;;  %v892_v22 = vcombine.low %v883_v7, %v891_v14  ;;  %v893_v24 = vcombine.high %v883_v7, %v891_v14 }
 0x247   : > { %v1042_v25 = vcombine.high %v1034_v17, %v3203_v0  ;;  %v1043_v28 = vcombine.high %v1041_v18, %v3203_v0  ;;  %v1080_v29 = vpack.i.b16 %v1068_v62, %v1034_v17  ;;  %v1082_v31 = vshrl.u32 %v1034_v17, 16 }
 0x248   : > { %v1096_v32 = vpack.i.b16 %v1075_v63, %v1041_v18  ;;  %v1098_v33 = vshrl.u32 %v1041_v18, 16  ;;  %v866_v34 = vrot.slane %v858_v19, %v3599_v55  ;;  %v873_v35 = vrot.slane %v859_v21, %v3599_v55 }
 0x249   : > { %v1084_v36 = vpack.i.b16 %v1083_v11, %v1082_v31  ;;  %v1088_v37 = vpack.i.b16 %v1076_v3, %v1042_v25  ;;  %v1090_v38 = vshrl.u32 %v1042_v25, 16  ;;  %v1104_v39 = vpack.i.b16 %v1077_v4, %v1043_v28 }
 0x24a   : > { %v1100_v40 = vpack.i.b16 %v1099_v12, %v1098_v33  ;;  %v1106_v41 = vshrl.u32 %v1043_v28, 16  ;;  %v1110_v42 = vcombine.low %v1080_v29, %v1096_v32  ;;  %v874_v43 = vcombine.high %v866_v34, %v3203_v0 }
 0x24b   : > { %v1092_v44 = vpack.i.b16 %v1091_v15, %v1090_v38  ;;  %v1118_v45 = vcombine.low %v1088_v37, %v1104_v39  ;;  %v875_v46 = vcombine.high %v873_v35, %v3203_v0  ;;  %v914_v50 = vshrl.u32 %v866_v34, 16 }
 0x24c   : > { %v1108_v47 = vpack.i.b16 %v1107_v16, %v1106_v41  ;;  %v1117_v48 = vrot.slane %v1110_v42, %v3596_v52  ;;  %v1135_v49 = vcombine.low %v1084_v36, %v1100_v40  ;;  %v922_v51 = vshrl.u32 %v874_v43, 16 }
 0x24d   : > { %v930_v53 = vshrl.u32 %v873_v35, 16  ;;  %v900_v54 = vrot.slane %v892_v22, %v3599_v55  ;;  %v907_v56 = vrot.slane %v893_v24, %v3599_v55  ;;  %v938_v58 = vshrl.u32 %v875_v46, 16 }
 0x24e   : > { %v1143_v57 = vcombine.low %v1092_v44, %v1108_v47  ;;  %v1125_v59 = vrot.slane %v1118_v45, %v3596_v52  ;;  %v1142_v60 = vrot.slane %v1135_v49, %v3596_v52 }
 0x24f   : > { %v908_v61 = vcombine.high %v900_v54, %v3203_v0  ;;  %v909_v62 = vcombine.high %v907_v56, %v3203_v0  ;;  %v912_v63 = vpack.i.b16 %v900_v54, %v866_v34  ;;  %v915_v1 = vshrl.u32 %v900_v54, 16 }
 0x250   : > { %v928_v2 = vpack.i.b16 %v907_v56, %v873_v35  ;;  %v931_v3 = vshrl.u32 %v907_v56, 16  ;;  %v1126_v4 = vcombine.low %v1117_v48, %v1125_v59  ;;  %v1150_v5 = vrot.slane %v1143_v57, %v3596_v52 }
 0x251   : > { %v916_v6 = vpack.i.b16 %v915_v1, %v914_v50  ;;  %v920_v7 = vpack.i.b16 %v908_v61, %v874_v43  ;;  %v923_v8 = vshrl.u32 %v908_v61, 16  ;;  %v936_v9 = vpack.i.b16 %v909_v62, %v875_v46 }
 0x252   : > { %v932_v10 = vpack.i.b16 %v931_v3, %v930_v53  ;;  %v939_v11 = vshrl.u32 %v909_v62, 16  ;;  %v942_v13 = vcombine.low %v912_v63, %v928_v2  ;;  %v1151_v15 = vcombine.low %v1142_v60, %v1150_v5  ;;  %v827_v60 = vpop.f32.mrb[0].mxu1 }
 0x253   : > { %v924_v12 = vpack.i.b16 %v923_v8, %v922_v51  ;;  %v950_v14 = vcombine.low %v920_v7, %v936_v9  ;;  %v1133_v19 = vrot.slane %v1126_v4, %v3599_v55  ;;  %v2634_v61 = vpop.f32.mrb[1].mxu1  ;;  %v3663_v1 = vand.u32 127, %v560_v26  ;;  %v2890_v4 = vld [vmem:[#allocation10 + $0x20] sm:$0xff]  }
 0x254   : > { %v940_v16 = vpack.i.b16 %v939_v11, %v938_v58  ;;  %v967_v17 = vcombine.low %v916_v6, %v932_v10  ;;  %v1158_v21 = vrot.slane %v1151_v15, %v3599_v55  ;;  %v949_v24 = vrot.slane %v942_v13, %v3596_v52  ;;  %v830_v62 = vpop.f32.mrb[2].mxu1 }
 0x255   : > { %v957_v18 = vrot.slane %v950_v14, %v3596_v52  ;;  %v1163_v35 = vshrl.u32 %v1133_v19, 16  ;;  %v1134_v43 = vcombine.high %v1133_v19, %v3203_v0  ;;  %v2635_v63 = vpop.f32.mrb[3].mxu1  ;;  %v570_v2 = vstv %s569_s21  ;;  %s3936_s21 = sld [smem:[#allocation28_spill]] }
 0x256   : > { %v975_v22 = vcombine.low %v924_v12, %v940_v16  ;;  %v1162_v25 = vpack.i.b16 %v1158_v21, %v1133_v19  ;;  %v974_v28 = vrot.slane %v967_v17, %v3596_v52  ;;  %v1164_v33 = vshrl.u32 %v1158_v21, 16 }
 0x257   : > { %v958_v31 = vcombine.low %v949_v24, %v957_v18  ;;  %v1159_v41 = vcombine.high %v1158_v21, %v3203_v0  ;;  %v1169_v50 = vshrl.u32 %v1134_v43, 16  ;;  %vm3666_vm2 = vcmp.ge.s32.totalorder %v3663_v1, %v570_v2 }
 0x258   : > { %v982_v29 = vrot.slane %v975_v22, %v3596_v52  ;;  %v1345_v32 = vsel %vm1340_vm1, %v1162_v25, 0  ;;  %v1165_v38 = vpack.i.b16 %v1164_v33, %v1163_v35  ;;  %v619_v17 = vsub.s32 2, %v3567_v27 }
 0x259   : > { %2637 = vmatpush3.bf16.xpose.msra.mxu1 %v1345_v32  ;;  %v965_v37 = vrot.slane %v958_v31, %v3599_v55  ;;  %v1168_v45 = vpack.i.b16 %v1159_v41, %v1134_v43  ;;  %v1170_v48 = vshrl.u32 %v1159_v41, 16  ;;  %vm562_vm7 = vcmp.lt.s32.totalorder %v3663_v1, 32  ;;  %v2899_v1 = vld [vmem:[#allocation12 + $0x28] sm:$0xff]  }
 0x25a   : > { %v983_v34 = vcombine.low %v974_v28, %v982_v29  ;;  %2642 = vmatprep.subr.bf16.mxu1 %v3204_v23  ;;  %v1391_v40 = vsel %vm1340_vm1, %v1165_v38, 0  ;;  %v620_v28 = vrot.slane %v3573_v30, %v619_v17 }
 0x25b   : > { %v995_v44 = vshrl.u32 %v965_v37, 16  ;;  %v1437_v47 = vsel %vm1340_vm1, %v1168_v45, 0  ;;  %v966_v51 = vcombine.high %v965_v37, %v3203_v0  ;;  %v1171_v53 = vpack.i.b16 %v1170_v48, %v1169_v50 }
 0x25c   : > { %v990_v36 = vrot.slane %v983_v34, %v3599_v55  ;;  %v828_v31 = vadd.f32 %v827_v60, %v620_v28 }
 0x25d   : > { %v1483_v56 = vsel %vm1340_vm1, %v1171_v53, 0  ;;  %v1001_v58 = vshrl.u32 %v966_v51, 16 }
 0x25e   : > { %v994_v39 = vpack.i.b16 %v990_v36, %v965_v37  ;;  %v996_v42 = vshrl.u32 %v990_v36, 16  ;;  %v991_v49 = vcombine.high %v990_v36, %v3203_v0  ;;  %v835_v37 = vpack.c.bf16 %v828_v31, %v828_v31 }
 0x260   : > { %2639 = vmatmul.mubr.msk.bf16.vlgmr.msra.gmra.mrb[4].mxu1 %vm1340_vm1, %v994_v39  ;;  %v997_v46 = vpack.i.b16 %v996_v42, %v995_v44  ;;  %v1000_v54 = vpack.i.b16 %v991_v49, %v966_v51  ;;  %v1002_v57 = vshrl.u32 %v991_v49, 16 }
 0x261   : > { %2643 = vmatpush3.bf16.xpose.msra.mxu1 %v1391_v40  ;;  %2644 = vmatprep.mubr.msk.bf16.mxu1 %vm3208_vm0, %v3204_v23 }
 0x262   : > { %2648 = vmatprep.subr.bf16.mxu1 %v3204_v23  ;;  %v1003_v59 = vpack.i.b16 %v1002_v57, %v1001_v58 }
 0x268   : > { %2645 = vmatmul.mubr.msk.bf16.vlgmr.msra.gmra.mrb[8].mxu1 %vm1340_vm1, %v997_v46 }
 0x269   : > { %2649 = vmatpush3.bf16.xpose.msra.mxu1 %v1437_v47  ;;  %2650 = vmatprep.mubr.msk.bf16.mxu1 %vm3208_vm0, %v3204_v23 }
 0x26a   : > { %2654 = vmatprep.subr.bf16.mxu1 %v3204_v23 }
 0x270   : > { %2651 = vmatmul.mubr.msk.bf16.vlgmr.msra.gmra.mrb[12].mxu1 %vm1340_vm1, %v1000_v54 }
 0x271   : > { %2655 = vmatpush3.bf16.xpose.msra.mxu1 %v1483_v56  ;;  %2656 = vmatprep.mubr.msk.bf16.mxu1 %vm3208_vm0, %v3204_v23 }
 0x272   : > { %2666 = vmatprep.subr.bf16.mxu1 %v3204_v23 }
 0x278   : > { %2657 = vmatmul.mubr.msk.bf16.vlgmr.msra.gmra.mrb[16].mxu1 %vm1340_vm1, %v1003_v59 }
 0x279   : > { %2668 = vmatprep.mubr.msk.bf16.mxu1 %vm3208_vm0, %v3204_v23 }
 0x333   : > { %v1381_v3 = vpop.f32.mrb[4].mxu1 }
 0x334   : > { %v1525_v5 = vmul.f32 0.35355338, %v1381_v3  ;;  %v2640_v6 = vpop.f32.mrb[5].mxu1 }
 0x335   : > { %v1384_v7 = vpop.f32.mrb[6].mxu1 }
 0x336   : > { %v2641_v8 = vpop.f32.mrb[7].mxu1  ;;  %v1531_v9 = vsel %vm3666_vm2, -1e+30, %v1525_v5 }
 0x337   : > { %v1536_v10 = vsel %vm1535_vm3, %v1531_v9, -inf }
 0x338   : > { %1537 = vmax.xlane.f32.xlu0 %v1536_v10 }
 0x33b   : > { %v1427_v26 = vpop.f32.mrb[8].mxu1 }
 0x33c   : > { %v1526_v11 = vmul.f32 0.35355338, %v1427_v26  ;;  %v2646_v12 = vpop.f32.mrb[9].mxu1 }
 0x33d   : > { %v1430_v13 = vpop.f32.mrb[10].mxu1 }
 0x33e   : > { %v2647_v14 = vpop.f32.mrb[11].mxu1  ;;  %v1532_v15 = vsel %vm3666_vm2, -1e+30, %v1526_v11 }
 0x33f   : > { %v1539_v16 = vsel %vm1535_vm3, %v1532_v15, -inf }
 0x340   : > { %1540 = vmax.xlane.f32.xlu1 %v1539_v16 }
 0x343   : > { %v1473_v18 = vpop.f32.mrb[12].mxu1 }
 0x344   : > { %v1527_v19 = vmul.f32 0.35355338, %v1473_v18  ;;  %v2652_v21 = vpop.f32.mrb[13].mxu1 }
 0x345   : > { %v1476_v22 = vpop.f32.mrb[14].mxu1 }
 0x346   : > { %v2653_v24 = vpop.f32.mrb[15].mxu1  ;;  %v1533_v25 = vsel %vm3666_vm2, -1e+30, %v1527_v19 }
 0x347   : > { %v1542_v29 = vsel %vm1535_vm3, %v1533_v25, -inf }
 0x348   : > { %1543 = vmax.xlane.f32.xlu0 %v1542_v29 }
 0x34b   : > { %v1519_v32 = vpop.f32.mrb[16].mxu1 }
 0x34c   : > { %v1528_v33 = vmul.f32 0.35355338, %v1519_v32  ;;  %v2658_v34 = vpop.f32.mrb[17].mxu1 }
 0x34d   : > { %v1522_v35 = vpop.f32.mrb[18].mxu1 }
 0x34e   : > { %v2659_v36 = vpop.f32.mrb[19].mxu1  ;;  %v1534_v27 = vsel %vm3666_vm2, -1e+30, %v1528_v33 }
 0x34f   : > { %v1545_v38 = vsel %vm1535_vm3, %v1534_v27, -inf }
 0x350   : > { %1546 = vmax.xlane.f32.xlu0 %v1545_v38 }
 0x351   : > { %1173 = vrot.lane.b32.xlu1 %v835_v37, %s3206_s17 }
 0x3c5   : > { %v1538_v39 = vpop.xlane.xlu0 %1537 }
 0x3c6   : > { %v1548_v30 = vsub.f32 %v1531_v9, %v1538_v39  ;;  %v1185_v9 = vrot.slane %v835_v37, %v3596_v52 }
 0x3c8   : > { %v1552_v40 = vmul.f32 1.442695, %v1548_v30 }
 0x3ca   : > { %2910 = vpow2.f32 %v1552_v40 }
 0x3cd   : > { %v1541_v41 = vpop.xlane.xlu1 %1540 }
 0x3ce   : > { %v1549_v42 = vsub.f32 %v1532_v15, %v1541_v41 }
 0x3d0   : > { %v1554_v43 = vmul.f32 1.442695, %v1549_v42 }
 0x3d1   : > { %v1174_v60 = vpop.permute.xlu1 %1173 }
 0x3d2   : > { %2912 = vpow2.f32 %v1554_v43  ;;  %v1219_v2 = vrot.slane %v1174_v60, %v3596_v52 }
 0x3d4   : > { %v3685_v44 = vpop.eup %2910 }
 0x3d5   : > { %v1560_v45 = vsel %vm1535_vm3, %v3685_v44, 0.0  ;;  %v1544_v48 = vpop.xlane.xlu0 %1543 }
 0x3d6   : > { %1561 = vadd.xlane.f32.xlu1 %v1560_v45  ;;  %v1550_v49 = vsub.f32 %v1533_v25, %v1544_v48 }
 0x3d8   : > { %v1556_v50 = vmul.f32 1.442695, %v1550_v49 }
 0x3da   : > { %2914 = vpow2.f32 %v1556_v50 }
 0x3dc   : > { %v3689_v46 = vpop.eup %2912 }
 0x3dd   : > { %v1563_v47 = vsel %vm1535_vm3, %v3689_v46, 0.0  ;;  %v1547_v51 = vpop.xlane.xlu0 %1546 }
 0x3de   : > { %1564 = vadd.xlane.f32.xlu0 %v1563_v47  ;;  %v1551_v53 = vsub.f32 %v1534_v27, %v1547_v51 }
 0x3e0   : > { %v1558_v54 = vmul.f32 1.442695, %v1551_v53 }
 0x3e2   : > { %2916 = vpow2.f32 %v1558_v54 }
 0x3e4   : > { %v3695_v56 = vpop.eup %2914 }
 0x3e5   : > { %v1566_v57 = vsel %vm1535_vm3, %v3695_v56, 0.0 }
 0x3e7   : > { %1177 = vrot.lane.b32.xlu1 %v835_v37, %s3205_s27 }
 0x3ec   : > { %v3699_v58 = vpop.eup %2916 }
 0x3ed   : > { %v1569_v59 = vsel %vm1535_vm3, %v3699_v58, 0.0 }
 0x3f4   : > { %1175 = vrot.lane.b32.xlu0 %v835_v37, %s3207_s0 }
 0x40b   : > { %1567 = vadd.xlane.f32.xlu1 %v1566_v57 }
 0x413   : > { %1570 = vadd.xlane.f32.xlu0 %v1569_v59 }
 0x463   : > { %v1562_v61 = vpop.xlane.xlu1 %1561 }
 0x464   : > { %2918 = vrcp.f32 %v1562_v61 }
 0x467   : > { %v1178_v62 = vpop.permute.xlu1 %1177 }
 0x468   : > { %v1227_v63 = vrot.slane %v1178_v62, %v3596_v52 }
 0x46a   : > { %v1228_v3 = vcombine.low %v1219_v2, %v1227_v63  ;;  %v1229_v6 = vcombine.high %v1219_v2, %v1227_v63 }
 0x46b   : > { %v1565_v5 = vpop.xlane.xlu0 %1564 }
 0x46c   : > { %v1236_v7 = vrot.slane %v1228_v3, %v3599_v55  ;;  %v1243_v26 = vrot.slane %v1229_v6, %v3599_v55  ;;  %2920 = vrcp.f32 %v1565_v5 }
 0x46e   : > { %v1244_v13 = vcombine.high %v1236_v7, %v3203_v0  ;;  %v1245_v16 = vcombine.high %v1243_v26, %v3203_v0  ;;  %v1251_v17 = vshrl.u32 %v1236_v7, 16  ;;  %v1267_v25 = vshrl.u32 %v1243_v26, 16  ;;  %v2919_v45 = vpop.eup %2918 }
 0x46f   : > { %v1176_v8 = vpop.permute.xlu0 %1175  ;;  %v1576_v54 = vmul.f32 %v2919_v45, %v3685_v44 }
 0x470   : > { %v1193_v10 = vrot.slane %v1176_v8, %v3596_v52  ;;  %v1259_v24 = vshrl.u32 %v1244_v13, 16  ;;  %v1275_v35 = vshrl.u32 %v1245_v16, 16 }
 0x471   : > { %v1580_v3 = vsel %vm3666_vm2, 0.0, %v1576_v54 }
 0x472   : > { %v1194_v11 = vcombine.low %v1185_v9, %v1193_v10  ;;  %v1195_v12 = vcombine.high %v1185_v9, %v1193_v10  ;;  %v1584_v10 = vpack.c.bf16 %v1580_v3, %v1580_v3 }
 0x474   : > { %v1202_v14 = vrot.slane %v1194_v11, %v3599_v55  ;;  %v1209_v15 = vrot.slane %v1195_v12, %v3599_v55 }
 0x476   : > { %v1210_v18 = vcombine.high %v1202_v14, %v3203_v0  ;;  %v1211_v19 = vcombine.high %v1209_v15, %v3203_v0  ;;  %v1248_v21 = vpack.i.b16 %v1236_v7, %v1202_v14  ;;  %v1250_v22 = vshrl.u32 %v1202_v14, 16  ;;  %v2921_v48 = vpop.eup %2920 }
 0x477   : > { %v1264_v28 = vpack.i.b16 %v1243_v26, %v1209_v15  ;;  %v1266_v29 = vshrl.u32 %v1209_v15, 16  ;;  %v1577_v60 = vmul.f32 %v2921_v48, %v3689_v46 }
 0x478   : > { %v1252_v31 = vpack.i.b16 %v1251_v17, %v1250_v22  ;;  %v1256_v32 = vpack.i.b16 %v1244_v13, %v1210_v18  ;;  %v1258_v33 = vshrl.u32 %v1210_v18, 16  ;;  %v1272_v34 = vpack.i.b16 %v1245_v16, %v1211_v19 }
 0x479   : > { %v1268_v36 = vpack.i.b16 %v1267_v25, %v1266_v29  ;;  %v1274_v27 = vshrl.u32 %v1211_v19, 16  ;;  %v1278_v37 = vcombine.low %v1248_v21, %v1264_v28  ;;  %v1581_v9 = vsel %vm3666_vm2, 0.0, %v1577_v60  ;;  %v2887_v28 = vld [vmem:[#allocation10 + $0x8] sm:$0xff]   ;;  %v2888_v29 = vld [vmem:[#allocation10 + $0x10] sm:$0xff]  }
 0x47a   : > { %v1260_v38 = vpack.i.b16 %v1259_v24, %v1258_v33  ;;  %v1286_v39 = vcombine.low %v1256_v32, %v1272_v34  ;;  %v1585_v12 = vpack.c.bf16 %v1581_v9, %v1581_v9  ;;  %v2892_v32 = vld [vmem:[#allocation10 + $0x30] sm:$0xff]  }
 0x47b   : > { %v1276_v30 = vpack.i.b16 %v1275_v35, %v1274_v27  ;;  %v1303_v40 = vcombine.low %v1252_v31, %v1268_v36  ;;  %v1285_v41 = vrot.slane %v1278_v37, %v3596_v52  ;;  %v2891_v31 = vld [vmem:[#allocation10 + $0x28] sm:$0xff]  }
 0x47c   : > { %v1293_v42 = vrot.slane %v1286_v39, %v3596_v52 }
 0x47d   : > { %v1311_v43 = vcombine.low %v1260_v38, %v1276_v30  ;;  %v1310_v49 = vrot.slane %v1303_v40, %v3596_v52 }
 0x47e   : > { %v1294_v47 = vcombine.low %v1285_v41, %v1293_v42 }
 0x47f   : > { %v1318_v50 = vrot.slane %v1311_v43, %v3596_v52 }
 0x480   : > { %v1301_v51 = vrot.slane %v1294_v47, %v3599_v55 }
 0x481   : > { %v1319_v53 = vcombine.low %v1310_v49, %v1318_v50 }
 0x482   : > { %v1302_v57 = vcombine.high %v1301_v51, %v3203_v0  ;;  %v1331_v62 = vshrl.u32 %v1301_v51, 16 }
 0x483   : > { %v1326_v59 = vrot.slane %v1319_v53, %v3599_v55 }
 0x484   : > { %v1337_v5 = vshrl.u32 %v1302_v57, 16 }
 0x485   : > { %v1330_v61 = vpack.i.b16 %v1326_v59, %v1301_v51  ;;  %v1332_v63 = vshrl.u32 %v1326_v59, 16  ;;  %v1327_v2 = vcombine.high %v1326_v59, %v3203_v0 }
 0x487   : > { %v1593_v6 = vsel %vm1591_vm4, %v1330_v61, 0  ;;  %v1333_v7 = vpack.i.b16 %v1332_v63, %v1331_v62  ;;  %v1336_v44 = vpack.i.b16 %v1327_v2, %v1302_v57  ;;  %v1338_v8 = vshrl.u32 %v1327_v2, 16 }
 0x488   : > { %2661 = vmatpush3.bf16.msra.mxu0 %v1593_v6 }
 0x489   : > { %v1639_v46 = vsel %vm1591_vm4, %v1333_v7, 0  ;;  %2672 = vmatprep.subr.bf16.mxu0 %v3204_v23  ;;  %v1339_v26 = vpack.i.b16 %v1338_v8, %v1337_v5  ;;  %v1685_v11 = vsel %vm1591_vm4, %v1336_v44, 0 }
 0x48a   : > { %2667 = vmatpush3.bf16.msra.mxu1 %v1639_v46 }
 0x48b   : > { %2663 = vmatmul.mubr.msk.bf16.vlgmr.msra.gmra.mrb[4].mxu0 %vm1535_vm3, %v1584_v10  ;;  %2678 = vmatprep.subr.bf16.mxu1 %v3204_v23  ;;  %v1731_v13 = vsel %vm1591_vm4, %v1339_v26, 0 }
 0x48c   : > { %2673 = vmatpush3.bf16.msra.mxu0 %v1685_v11  ;;  %2674 = vmatprep.mubr.msk.bf16.mxu0 %vm3208_vm0, %v3204_v23 }
 0x48d   : > { %2669 = vmatmul.mubr.msk.bf16.vlgmr.msra.gmra.mrb[20].mxu1 %vm1535_vm3, %v1585_v12  ;;  %2684 = vmatprep.subr.bf16.mxu0 %v3204_v23 }
 0x48e   : > { %2679 = vmatpush3.bf16.msra.mxu1 %v1731_v13  ;;  %2680 = vmatprep.mubr.msk.bf16.mxu1 %vm3208_vm0, %v3204_v23 }
 0x48f   : > { %2704 = vmatprep.subr.bf16.mxu1 %v3204_v23 }
 0x498   : > { %v1568_v14 = vpop.xlane.xlu1 %1567 }
 0x499   : > { %2922 = vrcp.f32 %v1568_v14 }
 0x4a0   : > { %v1571_v15 = vpop.xlane.xlu0 %1570 }
 0x4a1   : > { %2924 = vrcp.f32 %v1571_v15 }
 0x4a3   : > { %v2923_v16 = vpop.eup %2922 }
 0x4a4   : > { %v1578_v17 = vmul.f32 %v2923_v16, %v3695_v56  ;;  %v2886_v56 = vld [vmem:[#allocation10] sm:$0xff]  }
 0x4a6   : > { %v1582_v18 = vsel %vm3666_vm2, 0.0, %v1578_v17 }
 0x4a7   : > { %v1586_v19 = vpack.c.bf16 %v1582_v18, %v1582_v18 }
 0x4a9   : > { %2675 = vmatmul.mubr.msk.bf16.vlgmr.msra.gmra.mrb[8].mxu0 %vm1535_vm3, %v1586_v19 }
 0x4aa   : > { %2700 = vmatprep.mubr.msk.bf16.mxu0 %vm3208_vm0, %v3204_v23  ;;  %2685 = vmatpush3.bf16.msra.mxu0 %v2886_v56 }
 0x4ab   : > { %v2925_v21 = vpop.eup %2924  ;;  %2686 = vmatprep.subr.bf16.mxu0 %v3204_v23 }
 0x4ac   : > { %v1579_v22 = vmul.f32 %v2925_v21, %v3699_v58  ;;  %v2889_v58 = vld [vmem:[#allocation10 + $0x18] sm:$0xff]  }
 0x4ae   : > { %v1583_v24 = vsel %vm3666_vm2, 0.0, %v1579_v22  ;;  %2687 = vmatpush3.bf16.msra.mxu0 %v2887_v28 }
 0x4af   : > { %v1587_v25 = vpack.c.bf16 %v1583_v24, %v1583_v24  ;;  %2688 = vmatprep.subr.bf16.mxu0 %v3204_v23 }
 0x4b1   : > { %2681 = vmatmul.mubr.msk.bf16.vlgmr.msra.gmra.mrb[24].mxu1 %vm1535_vm3, %v1587_v25 }
 0x4b2   : > { %2720 = vmatprep.mubr.msk.bf16.mxu1 %vm3208_vm0, %v3204_v23  ;;  %2689 = vmatpush3.bf16.msra.mxu0 %v2888_v29 }
 0x4b3   : > { %2690 = vmatprep.subr.bf16.mxu0 %v3204_v23 }
 0x4b6   : > { %2691 = vmatpush3.bf16.msra.mxu0 %v2889_v58 }
 0x4b7   : > { %2692 = vmatprep.subr.bf16.mxu0 %v3204_v23 }
 0x4ba   : > { %2693 = vmatpush3.bf16.msra.mxu0 %v2890_v4 }
 0x4bb   : > { %2694 = vmatprep.subr.bf16.mxu0 %v3204_v23 }
 0x4be   : > { %2695 = vmatpush3.bf16.msra.mxu0 %v2891_v31 }
 0x4bf   : > { %2696 = vmatprep.subr.bf16.mxu0 %v3204_v23 }
 0x4c2   : > { %2697 = vmatpush3.bf16.msra.mxu0 %v2892_v32 }
 0x4c3   : > { %2698 = vmatprep.subr.bf16.mxu0 %v3204_v23 }
 0x55e   : > { %v1629_v33 = vpop.f32.mrb[4].mxu0 }
 0x55f   : > { %v2664_v34 = vpop.f32.mrb[5].mxu0  ;;  %v1773_v30 = vpack.c.bf16 %v1629_v33, %v1629_v33  ;;  %v2893_v33 = vld [vmem:[#allocation10 + $0x38] sm:$0xff]  }
 0x560   : > { %v1632_v35 = vpop.f32.mrb[6].mxu0  ;;  %v1675_v36 = vpop.f32.mrb[20].mxu1  ;;  %2699 = vmatpush3.bf16.msra.mxu0 %v2893_v33 }
 0x561   : > { %v2665_v27 = vpop.f32.mrb[7].mxu0  ;;  %v2670_v37 = vpop.f32.mrb[21].mxu1  ;;  %v1780_v45 = vrot.slane %v1773_v30, %v3596_v52  ;;  %v1807_v51 = vpack.c.bf16 %v1675_v36, %v1675_v36  ;;  %2724 = vmatprep.subr.bf16.mxu0 %v3204_v23 }
 0x562   : > { %v1678_v38 = vpop.f32.mrb[22].mxu1 }
 0x563   : > { %v2671_v39 = vpop.f32.mrb[23].mxu1  ;;  %v1814_v62 = vrot.slane %v1807_v51, %v3596_v52 }
 0x57c   : > { %v1721_v40 = vpop.f32.mrb[8].mxu0 }
 0x57d   : > { %v1781_v41 = vpack.c.bf16 %v1721_v40, %v1721_v40  ;;  %v2676_v42 = vpop.f32.mrb[9].mxu0 }
 0x57e   : > { %v1724_v43 = vpop.f32.mrb[10].mxu0 }
 0x57f   : > { %v1788_v47 = vrot.slane %v1781_v41, %v3596_v52  ;;  %v2677_v48 = vpop.f32.mrb[11].mxu0 }
 0x581   : > { %v1789_v49 = vcombine.low %v1780_v45, %v1788_v47  ;;  %v1790_v50 = vcombine.high %v1780_v45, %v1788_v47 }
 0x583   : > { %v1797_v60 = vrot.slane %v1789_v49, %v3599_v55  ;;  %v1804_v2 = vrot.slane %v1790_v50, %v3599_v55 }
 0x584   : > { %v1767_v53 = vpop.f32.mrb[24].mxu1 }
 0x585   : > { %v2682_v54 = vpop.f32.mrb[25].mxu1  ;;  %v1815_v57 = vpack.c.bf16 %v1767_v53, %v1767_v53  ;;  %v1805_v6 = vcombine.high %v1797_v60, %v3203_v0  ;;  %v1806_v8 = vcombine.high %v1804_v2, %v3203_v0  ;;  %v1845_v9 = vshrl.u32 %v1797_v60, 16 }
 0x586   : > { %v1770_v59 = vpop.f32.mrb[26].mxu1  ;;  %v1861_v13 = vshrl.u32 %v1804_v2, 16  ;;  %v2529_v54 = vld [vmem:[%s3887_s6] ss:$0 sm:$0xff] }
 0x587   : > { %v2683_v61 = vpop.f32.mrb[27].mxu1  ;;  %v1822_v63 = vrot.slane %v1815_v57, %v3596_v52  ;;  %v1853_v12 = vshrl.u32 %v1805_v6, 16  ;;  %v1869_v21 = vshrl.u32 %v1806_v8, 16 }
 0x589   : > { %v1823_v3 = vcombine.low %v1814_v62, %v1822_v63  ;;  %v1824_v5 = vcombine.high %v1814_v62, %v1822_v63 }
 0x58b   : > { %v1831_v7 = vrot.slane %v1823_v3, %v3599_v55  ;;  %v1838_v44 = vrot.slane %v1824_v5, %v3599_v55  ;;  %v2895_v3 = vld [vmem:[#allocation12 + $0x8] sm:$0xff]  }
 0x58d   : > { %v1839_v46 = vcombine.high %v1831_v7, %v3203_v0  ;;  %v1840_v10 = vcombine.high %v1838_v44, %v3203_v0  ;;  %v1843_v26 = vpack.i.b16 %v1831_v7, %v1797_v60  ;;  %v1846_v11 = vshrl.u32 %v1831_v7, 16 }
 0x58e   : > { %v1859_v14 = vpack.i.b16 %v1838_v44, %v1804_v2  ;;  %v1862_v15 = vshrl.u32 %v1838_v44, 16  ;;  %v2894_v2 = vld [vmem:[#allocation12] sm:$0xff]   ;;  %v3797_v7 = vsel %vm562_vm7, 1.0, %v3204_v23 }
 0x58f   : > { %v1847_v16 = vpack.i.b16 %v1846_v11, %v1845_v9  ;;  %v1851_v17 = vpack.i.b16 %v1839_v46, %v1805_v6  ;;  %v1854_v18 = vshrl.u32 %v1839_v46, 16  ;;  %v1867_v19 = vpack.i.b16 %v1840_v10, %v1806_v8  ;;  %2705 = vmatpush3.bf16.msra.mxu1 %v2894_v2  ;;  %v2896_v9 = vld [vmem:[#allocation12 + $0x10] sm:$0xff]   ;;  %v2897_v46 = vld [vmem:[#allocation12 + $0x18] sm:$0xff]  }
 0x590   : > { %v1863_v22 = vpack.i.b16 %v1862_v15, %v1861_v13  ;;  %v1870_v24 = vshrl.u32 %v1840_v10, 16  ;;  %v1873_v25 = vcombine.low %v1843_v26, %v1859_v14  ;;  %2706 = vmatprep.subr.bf16.mxu1 %v3204_v23  ;;  %v2898_v10 = vld [vmem:[#allocation12 + $0x20] sm:$0xff]   ;;  %v2900_v26 = vld [vmem:[#allocation12 + $0x30] sm:$0xff]   ;;  %v2901_v11 = vld [vmem:[#allocation12 + $0x38] sm:$0xff]  }
 0x591   : > { %v1855_v56 = vpack.i.b16 %v1854_v18, %v1853_v12  ;;  %v1881_v28 = vcombine.low %v1851_v17, %v1867_v19  ;;  %v2902_v12 = vld [vmem:[#allocation13] sm:$0xff]   ;;  %v2903_v13 = vld [vmem:[#allocation13 + $0x8] sm:$0xff]   ;;  %v2904_v14 = vld [vmem:[#allocation13 + $0x10] sm:$0xff]  }
 0x592   : > { %v1871_v29 = vpack.i.b16 %v1870_v24, %v1869_v21  ;;  %v1898_v58 = vcombine.low %v1847_v16, %v1863_v22  ;;  %v1880_v4 = vrot.slane %v1873_v25, %v3596_v52  ;;  %v2905_v15 = vld [vmem:[#allocation13 + $0x18] sm:$0xff]   ;;  %v2906_v16 = vld [vmem:[#allocation13 + $0x20] sm:$0xff]   ;;  %v2907_v17 = vld [vmem:[#allocation13 + $0x28] sm:$0xff]  }
 0x593   : > { %v1888_v31 = vrot.slane %v1881_v28, %v3596_v52  ;;  %2707 = vmatpush3.bf16.msra.mxu1 %v2895_v3  ;;  %v2538_v24 = vld [vmem:[%s3888_s7] ss:$0 sm:$0xff] }
 0x594   : > { %v1906_v32 = vcombine.low %v1855_v56, %v1871_v29  ;;  %v1905_v35 = vrot.slane %v1898_v58, %v3596_v52  ;;  %2708 = vmatprep.subr.bf16.mxu1 %v3204_v23  ;;  %v2539_v56 = vld [vmem:[%s3934_s2] ss:$0 sm:$0xff]  ;;  %s2561_s2 = sshll.u32 %s3325_s18, 7  ;;  %s3211_s18 = smov [#allocation15]  }
 0x595   : > { %v1889_v34 = vcombine.low %v1880_v4, %v1888_v31  ;;  %v2908_v4 = vld [vmem:[#allocation13 + $0x30] sm:$0xff]   ;;  %v2909_v31 = vld [vmem:[#allocation13 + $0x38] sm:$0xff]   ;;  %s3114_s8 = sshll.u32 %s3211_s18, 4  ;;  %s3115_s8 = int_to_ptr.vmem [resolvable:$false] %s3114_s8 }
 0x596   : > { %v1913_v36 = vrot.slane %v1906_v32, %v3596_v52  ;;  %p3117_p7 = scmp.lt.s32.totalorder %s3839_s9, %s3115_s8 }
 0x597   : > { %v1896_v27 = vrot.slane %v1889_v34, %v3599_v55  ;;  %2709 = vmatpush3.bf16.msra.mxu1 %v2896_v9 }
 0x598   : > { %v1914_v37 = vcombine.low %v1905_v35, %v1913_v36  ;;  %2710 = vmatprep.subr.bf16.mxu1 %v3204_v23 }
 0x599   : > { %v1897_v39 = vcombine.high %v1896_v27, %v3203_v0  ;;  %v1926_v30 = vshrl.u32 %v1896_v27, 16 }
 0x59a   : > { %v1921_v38 = vrot.slane %v1914_v37, %v3599_v55 }
 0x59b   : > { %v1932_v47 = vshrl.u32 %v1897_v39, 16  ;;  %2711 = vmatpush3.bf16.msra.mxu1 %v2897_v46 }
 0x59c   : > { %v1927_v40 = vshrl.u32 %v1921_v38, 16  ;;  %v1922_v41 = vcombine.high %v1921_v38, %v3203_v0  ;;  %v1925_v42 = vpack.i.b16 %v1921_v38, %v1896_v27  ;;  %2712 = vmatprep.subr.bf16.mxu1 %v3204_v23 }
 0x59e   : > { %v1928_v43 = vpack.i.b16 %v1927_v40, %v1926_v30  ;;  %v1931_v45 = vpack.i.b16 %v1922_v41, %v1897_v39  ;;  %v1933_v48 = vshrl.u32 %v1922_v41, 16  ;;  %v2549_v39 = vld [vmem:[%s3936_s21] ss:$0 sm:$0xff] }
 0x59f   : > { %2713 = vmatpush3.bf16.msra.mxu1 %v2898_v10 }
 0x5a0   : > { %1935 = vrot.lane.b32.xlu0 %v1928_v43, %s3205_s27  ;;  %1937 = vrot.lane.b32.xlu1 %v1931_v45, %s3207_s0  ;;  %v1934_v52 = vpack.i.b16 %v1933_v48, %v1932_v47  ;;  %s3935_s27 = sld [smem:[#allocation27_spill]]  ;;  %s3939_s0 = sld [smem:[#allocation29_spill]] }
 0x5a1   : > { %2714 = vmatprep.subr.bf16.mxu1 %v3204_v23 }
 0x5a3   : > { %2715 = vmatpush3.bf16.msra.mxu1 %v2899_v1 }
 0x5a4   : > { %1939 = vrot.lane.b32.xlu1 %v1934_v52, %s3206_s17  ;;  %2716 = vmatprep.subr.bf16.mxu1 %v3204_v23 }
 0x5a6   : > { %v2540_v32 = vld [vmem:[%s3935_s27] ss:$0 sm:$0xff]  ;;  %s3837_s21 = scalar_lea.hbm %s3939_s0, %s2561_s2 }
 0x5a7   : > { %2717 = vmatpush3.bf16.msra.mxu1 %v2900_v26 }
 0x5a8   : > { %2718 = vmatprep.subr.bf16.mxu1 %v3204_v23 }
 0x5ab   : > { %2719 = vmatpush3.bf16.msra.mxu1 %v2901_v11 }
 0x612   : > { %v1936_v49 = vpop.permute.xlu0 %1935  ;;  %v1938_v55 = vpop.permute.xlu1 %1937 }
 0x613   : > { %v1943_v50 = vsel %vm1340_vm1, %v1925_v42, %v1936_v49 }
 0x614   : > { %v1946_v51 = vsel %vm1944_vm5, %v1943_v50, %v1938_v55 }
 0x616   : > { %v1940_v0 = vpop.permute.xlu1 %1939 }
 0x617   : > { %v1949_v53 = vsel %vm1947_vm6, %v1946_v51, %v1940_v0 }
 0x618   : > { %2701 = vmatmul.mubr.bf16.vlgmr.msra.gmra.mrb[12].mxu0 %v1949_v53  ;;  %v2558_v53 = vld [vmem:[%s3937_s10] ss:$0 sm:$0xff]  ;;  %s3116_s10 = scalar_lea.vmem %s3115_s8, 256 }
 0x619   : > { %2740 = vmatprep.mubr.msk.bf16.mxu0 %vm3208_vm0, %v3204_v23  ;;  %2725 = vmatpush3.bf16.msra.mxu0 %v2902_v12  ;;  %p3118_p4 = scmp.lt.s32.totalorder %s3116_s10, %s3110_s5 }
 0x61a   : > { %2726 = vmatprep.subr.bf16.mxu0 %v3204_v23 }
 0x61b   : > { %p3119_p6 = por %p3118_p4, %p3117_p7 }
 0x61d   : > { %2727 = vmatpush3.bf16.msra.mxu0 %v2903_v13  ;;  %p3120_p12 = pnand %p3119_p6, %p3113_p10 }
 0x61e   : > { %2728 = vmatprep.subr.bf16.mxu0 %v3204_v23 }
 0x621   : > { %2729 = vmatpush3.bf16.msra.mxu0 %v2904_v14 }
 0x622   : > { %2730 = vmatprep.subr.bf16.mxu0 %v3204_v23 }
 0x625   : > { %2731 = vmatpush3.bf16.msra.mxu0 %v2905_v15 }
 0x626   : > { %2732 = vmatprep.subr.bf16.mxu0 %v3204_v23 }
 0x629   : > { %2733 = vmatpush3.bf16.msra.mxu0 %v2906_v16 }
 0x62a   : > { %2734 = vmatprep.subr.bf16.mxu0 %v3204_v23 }
 0x62d   : > { %2735 = vmatpush3.bf16.msra.mxu0 %v2907_v17 }
 0x62e   : > { %2736 = vmatprep.subr.bf16.mxu0 %v3204_v23 }
 0x631   : > { %2737 = vmatpush3.bf16.msra.mxu0 %v2908_v4 }
 0x632   : > { %2738 = vmatprep.subr.bf16.mxu0 %v3204_v23 }
 0x635   : > { %2739 = vmatpush3.bf16.msra.mxu0 %v2909_v31 }
 0x6eb   : > { %v2056_v57 = vpop.f32.mrb[12].mxu0 }
 0x6ec   : > { %v2057_v59 = vadd.f32 %v2529_v54, %v2056_v57  ;;  %v2702_v60 = vpop.f32.mrb[13].mxu0  ;;  %v2559_v57 = vld [vmem:[%s3938_s15] ss:$0 sm:$0xff] }
 0x6ed   : > { %v2059_v61 = vpop.f32.mrb[14].mxu0 }
 0x6ee   : > { %v2703_v62 = vpop.f32.mrb[15].mxu0  ;;  %v2062_v63 = vadd.f32 %v2057_v59, %v3557_v20 }
 0x6f0   : > { %2065 = vadd.xlane.f32.xlu0 %v2062_v63 }
 0x77d   : > { %v2066_v5 = vpop.xlane.xlu0 %2065 }
 0x77e   : > { %v2067_v6 = vmul.f32 0.03125, %v2066_v5 }
 0x780   : > { %v2068_v44 = vsub.f32 %v2062_v63, %v2067_v6 }
 0x782   : > { %v2069_v8 = vmul.f32 %v3797_v7, %v2068_v44 }
 0x784   : > { %v2070_v20 = vmul.f32 %v2069_v8, %v2069_v8 }
 0x786   : > { %2071 = vadd.xlane.f32.xlu1 %v2070_v20 }
 0x813   : > { %v2072_v18 = vpop.xlane.xlu1 %2071 }
 0x814   : > { %v2073_v19 = vmul.f32 0.03125, %v2072_v18 }
 0x816   : > { %v2074_v21 = vadd.f32 1e-12, %v2073_v19 }
 0x818   : > { %2926 = vrsqrt.f32 %v2074_v21 }
 0x822   : > { %v2927_v22 = vpop.eup %2926 }
 0x823   : > { %v2076_v25 = vmul.f32 %v2927_v22, %v2069_v8 }
 0x825   : > { %v2083_v28 = vmul.f32 %v2538_v24, %v2076_v25 }
 0x827   : > { %v2090_v29 = vadd.f32 %v2539_v56, %v2083_v28 }
 0x829   : > { %v2091_v58 = vpack.c.bf16 %v2090_v29, %v2090_v29 }
 0x82b   : > { %2721 = vmatmul.mubr.bf16.vlgmr.msra.gmra.mrb[28].mxu1 %v2091_v58 }
 0x8fe   : > { %v2197_v33 = vpop.f32.mrb[28].mxu1 }
 0x8ff   : > { %v2198_v34 = vadd.f32 %v2540_v32, %v2197_v33  ;;  %v2722_v35 = vpop.f32.mrb[29].mxu1 }
 0x900   : > { %v2200_v36 = vpop.f32.mrb[30].mxu1 }
 0x901   : > { %v2203_v27 = vmax.f32 %v2198_v34, 0.0  ;;  %v2723_v37 = vpop.f32.mrb[31].mxu1 }
 0x903   : > { %v2204_v38 = vpack.c.bf16 %v2203_v27, %v2203_v27 }
 0x905   : > { %2741 = vmatmul.mubr.bf16.vlgmr.msra.gmra.mrb[16].mxu0 %v2204_v38 }
 0x9d8   : > { %v2310_v30 = vpop.f32.mrb[16].mxu0 }
 0x9d9   : > { %v2311_v23 = vadd.f32 %v2549_v39, %v2310_v30  ;;  %v2742_v40 = vpop.f32.mrb[17].mxu0 }
 0x9da   : > { %v2313_v41 = vpop.f32.mrb[18].mxu0 }
 0x9db   : > { %v2743_v42 = vpop.f32.mrb[19].mxu0  ;;  %v2316_v43 = vadd.f32 %v2311_v23, %v2090_v29 }
 0x9dd   : > { %2319 = vadd.xlane.f32.xlu0 %v2316_v43 }
 0xa6a   : > { %v2320_v45 = vpop.xlane.xlu0 %2319 }
 0xa6b   : > { %v2321_v47 = vmul.f32 0.03125, %v2320_v45 }
 0xa6d   : > { %v2322_v48 = vsub.f32 %v2316_v43, %v2321_v47 }
 0xa6f   : > { %v2323_v52 = vmul.f32 %v3797_v7, %v2322_v48 }
 0xa71   : > { %v2324_v49 = vmul.f32 %v2323_v52, %v2323_v52 }
 0xa73   : > { %2325 = vadd.xlane.f32.xlu0 %v2324_v49 }
 0xb00   : > { %v2326_v55 = vpop.xlane.xlu0 %2325 }
 0xb01   : > { %v2327_v50 = vmul.f32 0.03125, %v2326_v55 }
 0xb03   : > { %v2328_v51 = vadd.f32 1e-12, %v2327_v50 }
 0xb05   : > { %2928 = vrsqrt.f32 %v2328_v51 }
 0xb0f   : > { %v2929_v0 = vpop.eup %2928 }
 0xb10   : > { %v2330_v54 = vmul.f32 %v2929_v0, %v2323_v52 }
 0xb12   : > { %v2337_v59 = vmul.f32 %v2558_v53, %v2330_v54 }
 0xb14   : > { %v2344_v60 = vadd.f32 %v2559_v57, %v2337_v59 }
 0xb16   : > { %2345 = vst [vmem:[%s558_s19] sm:$0xff] %v2344_v60 }
 0xb17   : > { %3123 = shalt.err (!%p3120_p12)
}
 0xb18   : > { %s3124_s22 = scalar_lea.hbm %s3837_s21, 128  ;;  %s3128_s15 = scalar_lea.hbm %s3939_s0, 256 }
 0xb19   : > { %p3125_p9 = scmp.ne.s32.totalorder %s3837_s21, %s3124_s22  ;;  %p3129_p11 = scmp.lt.u32.totalorder %s3837_s21, %s3939_s0 }
 0xb1a   : > { %p3130_p13 = scmp.lt.u32.totalorder %s3128_s15, %s3124_s22  ;;  %p3132_p0 = scmp.lt.u32.totalorder %s3124_s22, %s3837_s21 }
 0xb1b   : > { %p3126_p3 = pnand %p3125_p9, %p3940_p2 }
 0xb1c   : > { %p3131_p1 = por %p3130_p13, %p3129_p11 }
 0xb1d   : > { %p3127_p5 = pneg %p3126_p3 }
 0xb1e   : > { %p3133_p8 = por %p3132_p0, %p3131_p1 }
 0xb20   : > { %p3134_p10 = pnand %p3133_p8, %p3127_p5 }
 0xb22   : > { %3137 = shalt.err (!%p3134_p10)
}
 0xb23   : > { %2766 = dma.vmem_to_hbm [thread:$0]  (%p3940_p2), %s3839_s9, 128, %s3837_s21, %s2347_s26  }
 0xb24 PF: > { %s2372_s27 = sand.u32 1, %s3178_s28   ;;  %p3941_p7 = scmp.ne.s32.totalorder %s3923_s14, 0 }
 0xb25   : > { %p3942_p4 = scmp.ge.s32.totalorder %s3190_s16, 2  ;;  %s2373_s17 = scalar_lea.sflag [#allocation6], %s2372_s27 }
 0xb27   : > { %p2789_p6 = pnand %p3942_p4, %p3941_p7 }
 0xb29   : > { %3173 = dma.done.wait (!%p2789_p6), %s2373_s17, 128  }
 0xb2a   : > { %3175 = vsyncadd (!%p2789_p6), %s2373_s17, 4294967168  ;;  %p35_p12 = scmp.ge.s32.totalorder %s3464_s20, 4   ;;  %s3943_s28 = smov %s3182_s29 }
 0xb2b   : > { %s3944_s29 = smov %s3186_s30  ;;  %s3945_s30 = smov %s3476_s12 }
 0xb2c   : > { %s3946_s16 = smov %s3464_s20  ;;  %37 = sbr.rel (!%p35_p12) target bundleno = 23 (0x17), region = 141 }
 0xb33   :  { %2378 = vsyncpa [#allocation5], 1 }
 0xb34   :  { %2380 = vsyncpa [#allocation5 + $0x1], 1 }
 0xb35   :  { %2381 = vsyncpa [#allocation8], 1 }
 0xb36   :  { %2382 = vsyncpa [#allocation11], 1 }
 0xb37   :  { %2383 = vsyncpa [#allocation14], 1 }
 0xb38   :  { %2384 = vsyncpa [#allocation6], 1 }
 0xb39   :  { %2386 = vsyncpa [#allocation6 + $0x1], 1 }

</bundles_post_ra>
